<compile_context>
chip_gen: v6e
topology: v6e:2x2x1
jax: 0.10.0
libtpu: 0.0.40
codegen_flags: <defaults>
</compile_context>

<pallas_src>
import functools

import numpy as np
import jax
import jax.numpy as jnp
from jax.experimental import pallas as pl
from jax.experimental.pallas import tpu as pltpu

EPSILON = 1e-09
LOG_EPSILON = float(np.log(EPSILON))


# ----------------------------------------------------------------------------
# Pallas kernel: one batch tile of the negative-sampling loss
# ----------------------------------------------------------------------------
def _nsl_kernel(rep_ref, seg_ref, ctx_ref, x_ref, w_ref, out_ref, *, compute_dtype):
    # Lane-replicate the context with an MXU matmul against the constant
    # replication matrix R (D, N*D): ctx_tiled[b, n*D+d] = ctx[b, d].
    ctx_tiled = jnp.dot(ctx_ref[...], rep_ref[...],
                        preferred_element_type=compute_dtype)      # (TB, N*D)

    # Elementwise product with the flat gathered block (VPU, native dtype).
    y = x_ref[...] * ctx_tiled                                     # (TB, N*D)

    # Signed segment-sum on the MXU: Seg[n*D+d, m] = sign_m * (n == m), so
    # s[b, m] = sign_m * <gathered[b, m, :], ctx[b, :]>  (sign already folded).
    s = jnp.dot(y, seg_ref[...], preferred_element_type=jnp.float32)  # (TB, N)

    # Numerically stable log-sigmoid, clamped at log(EPSILON)
    # == clamp(sigmoid(s), EPSILON).log()
    logsig = jnp.minimum(s, 0.0) - jnp.log(1.0 + jnp.exp(-jnp.abs(s)))
    logsig = jnp.maximum(logsig, LOG_EPSILON)                      # (TB, N)

    # Weight per document, then reduce over the doc (sublane) axis so the
    # stored row is lane-dense. Padded docs have weight 0 -> contribute 0.
    w = w_ref[...].astype(jnp.float32)                             # (TB, 1)
    out_ref[0] = jnp.sum(logsig * w, axis=0, keepdims=True)        # (1, N)


# ----------------------------------------------------------------------------
# Tile-size / VMEM-budget selection (generation aware)
# ----------------------------------------------------------------------------
def _vmem_capacity_bytes():
    try:
        info = pltpu.get_tpu_info()
        cap = getattr(info, "vmem_capacity_bytes", None)
        if cap:
            return int(cap)
    except Exception:
        pass
    return 64 * 1024 * 1024  # assume the smallest generation (v7x) if unknown


def _pick_tile_b(B, N, D, itemsize):
    ND = N * D
    vmem_cap = _vmem_capacity_bytes()
    vmem_limit = min(vmem_cap // 2, 96 * 1024 * 1024)   # 32 MiB v7x, 64 MiB v5e/v6e
    tb_cap = 1024 if vmem_cap >= 100 * 1024 * 1024 else 512

    n_pad = ((N + 127) // 128) * 128
    d_pad = ((D + 127) // 128) * 128
    # VMEM-resident constants (each BlockSpec stream is double-buffered).
    const_bytes = 2 * (D * ND + ND * n_pad) * itemsize
    # Per-document working set: double-buffered native-dtype inputs + f32
    # intermediates (ctx_tiled, y, s/logsig) + weights row.
    per_doc = (2 * ND * itemsize + 2 * d_pad * itemsize
               + 3 * ND * 4 + 4 * n_pad + 16)
    budget = max(vmem_limit - const_bytes - (1 << 20), per_doc * 8)

    tb = (budget // per_doc) // 8 * 8
    tb = int(max(8, min(tb, tb_cap)))

    b_pad = ((B + 7) // 8) * 8
    tb = min(tb, b_pad)
    # Prefer >=2 grid blocks (v7x has 2 TensorCores); shrink TB instead of
    # collapsing to a single block whenever the batch is big enough.
    if tb >= b_pad and b_pad > 8:
        half = ((b_pad // 2 + 7) // 8) * 8
        tb = max(8, half)
    return tb, vmem_limit


# ----------------------------------------------------------------------------
# Wrapper: pallas_call with lane-dense layout
# ----------------------------------------------------------------------------
def negative_sampling_loss_pallas(context, gathered, weights, window):
    """context: (B, D); gathered: (B, N, D) = emb[[targets | noise]];
    weights: (B, 1) f32. Returns the scalar loss (negated weighted mean)."""
    B, N, D = gathered.shape
    ND = N * D
    dtype = gathered.dtype
    itemsize = jnp.dtype(dtype).itemsize

    TB, vmem_limit = _pick_tile_b(B, N, D, itemsize)
    num_blocks = pl.cdiv(B, TB)
    Bp = num_blocks * TB
    pad = Bp - B

    x_flat = gathered.reshape(B, ND)             # lane-dense stream (free reshape)
    context = context.astype(dtype)
    weights = weights.astype(jnp.float32)
    if pad:
        # padded docs get weight 0 -> contribute exactly 0 to the sum
        context = jnp.pad(context, ((0, pad), (0, 0)))
        x_flat = jnp.pad(x_flat, ((0, pad), (0, 0)))
        weights = jnp.pad(weights, ((0, pad), (0, 0)))

    # Constant matrices (kept VMEM-resident via constant index_map):
    #   rep[d, n*D+d'] = (d == d')          -> lane replication of ctx
    #   seg[n*D+d, m]  = sign_m * (n == m)  -> signed segment sum
    rep_np = np.tile(np.eye(D, dtype=np.float32), (1, N))                 # (D, ND)
    signs = np.where(np.arange(N) < window, 1.0, -1.0).astype(np.float32)
    seg_np = (np.kron(np.eye(N, dtype=np.float32),
                      np.ones((D, 1), np.float32)) * signs[None, :])      # (ND, N)
    rep = jnp.asarray(rep_np, dtype)
    seg = jnp.asarray(seg_np, dtype)

    cost = pl.CostEstimate(
        flops=(2 * Bp * D * ND          # replication matmul
               + 2 * Bp * ND * N        # segment-sum matmul
               + 2 * Bp * ND            # elementwise multiply
               + 8 * Bp * N),           # log-sigmoid arithmetic
        transcendentals=2 * Bp * N,
        bytes_accessed=(Bp * ND * itemsize + Bp * D * itemsize + Bp * 4
                        + num_blocks * N * 4 + (D * ND + ND * N) * itemsize),
    )

    partial = pl.pallas_call(
        functools.partial(_nsl_kernel, compute_dtype=dtype),
        out_shape=jax.ShapeDtypeStruct((num_blocks, 1, N), jnp.float32),
        grid=(num_blocks,),
        in_specs=[
            pl.BlockSpec((D, ND), lambda i: (0, 0)),     # rep (VMEM-resident)
            pl.BlockSpec((ND, N), lambda i: (0, 0)),     # seg (VMEM-resident)
            pl.BlockSpec((TB, D), lambda i: (i, 0)),     # context tile
            pl.BlockSpec((TB, ND), lambda i: (i, 0)),    # gathered tile (lane-dense)
            pl.BlockSpec((TB, 1), lambda i: (i, 0)),     # per-doc weights
        ],
        out_specs=pl.BlockSpec((1, 1, N), lambda i: (i, 0, 0)),
        compiler_params=pltpu.CompilerParams(
            dimension_semantics=("parallel",),
            vmem_limit_bytes=vmem_limit,
        ),
        cost_estimate=cost,
    )(rep, seg, context, x_flat, weights)

    # global reduction over the ORIGINAL batch size (not the padded one)
    return -(jnp.sum(partial) / B)


# ----------------------------------------------------------------------------
# AliasMultinomial (deterministic JAX/numpy re-implementation) -- glue
# ----------------------------------------------------------------------------
def build_alias(probs):
    probs = np.asarray(probs, dtype=np.float64)
    K = len(probs)
    q = np.zeros(K, dtype=np.float64)
    J = np.zeros(K, dtype=np.int32)
    smaller, larger = [], []
    for kk, p in enumerate(probs):
        q[kk] = K * p
        (smaller if q[kk] < 1.0 else larger).append(kk)
    while smaller and larger:
        small = smaller.pop()
        large = larger.pop()
        J[small] = large
        q[large] = q[large] - 1.0 + q[small]
        (smaller if q[large] < 1.0 else larger).append(large)
    q = np.clip(q, 0.0, 1.0)
    J = np.clip(J, 0, K - 1)
    return jnp.asarray(q, jnp.float32), jnp.asarray(J, jnp.int32)


def alias_draw(key, q, J, n):
    K = J.shape[0]
    kr, kb = jax.random.split(key)
    r = jax.random.randint(kr, (n,), 0, K)
    b = (jax.random.uniform(kb, (n,)) < q[r]).astype(jnp.int32)
    return r * b + J[r] * (1 - b)


# ----------------------------------------------------------------------------
# Full forward (embedding gathers + noise sampling in JAX, loss in Pallas)
# ----------------------------------------------------------------------------
def forward(emb, alias_q, alias_J, num_sampled,
            pivot_words, target_words, doc_vectors, loss_doc_weights, noise_key):
    B, W = target_words.shape

    pivot_vectors = emb[pivot_words]                          # (B, D)
    context = doc_vectors + pivot_vectors                     # (B, D)

    noise_idx = alias_draw(noise_key, alias_q, alias_J,
                           B * W * num_sampled).reshape(B, W * num_sampled)

    # one fused gather: [targets | noise] -> (B, W + W*S, D), native dtype
    all_idx = jnp.concatenate([target_words, noise_idx], axis=1)
    gathered = emb[all_idx]                                   # (B, N, D)

    w = loss_doc_weights.reshape(B, 1).astype(jnp.float32)    # (B, 1)

    return negative_sampling_loss_pallas(context, gathered, w, W)


if __name__ == "__main__":
    # small, deterministic configuration
    VOCAB = 64
    EMBED_DIM = 32
    BATCH = 8
    WINDOW = 8
    NUM_SAMPLED = 10

    key = jax.random.PRNGKey(0)
    k_emb, k_pivot, k_tgt, k_doc, k_w, k_noise = jax.random.split(key, 6)

    # deterministic "checkpoint": word_vectors and word_distribution
    word_vectors = jax.random.normal(k_emb, (VOCAB, EMBED_DIM), jnp.float32) * 0.1
    word_counts = np.arange(1, VOCAB + 1, dtype=np.float64)
    word_distribution = word_counts / word_counts.sum()
    alias_q, alias_J = build_alias(word_distribution)

    # inputs
    pivot_words = jax.random.randint(k_pivot, (BATCH,), 0, VOCAB)
    target_words = jax.random.randint(k_tgt, (BATCH, WINDOW), 0, VOCAB)
    doc_vectors = jax.random.normal(k_doc, (BATCH, EMBED_DIM), jnp.float32) * 0.1
    loss_doc_weights = jax.random.uniform(k_w, (BATCH,), jnp.float32) + 0.5

    loss = forward(word_vectors, alias_q, alias_J, NUM_SAMPLED,
                   pivot_words, target_words, doc_vectors, loss_doc_weights,
                   k_noise)
    loss = jax.block_until_ready(loss)

    # pure-JAX reference mirroring the PyTorch math as a sanity check
    ctx = doc_vectors + word_vectors[pivot_words]
    tgt = word_vectors[target_words]
    noise_idx = alias_draw(k_noise, alias_q, alias_J,
                           BATCH * WINDOW * NUM_SAMPLED).reshape(
                               BATCH, WINDOW * NUM_SAMPLED)
    nse = word_vectors[noise_idx]
    lt = jnp.log(jnp.maximum(jax.nn.sigmoid(
        jnp.sum(tgt * ctx[:, None, :], -1)), EPSILON)).sum(1)
    ln = jnp.log(jnp.maximum(jax.nn.sigmoid(
        -jnp.sum(nse * ctx[:, None, :], -1)), EPSILON)).sum(1)
    ref = -jnp.mean(loss_doc_weights * (lt + ln))

    assert np.allclose(np.asarray(loss), np.asarray(ref),
                       rtol=1e-4, atol=1e-4), (loss, ref)
    print("KERNEL_OK")
</pallas_src>

<mosaic_0001>
module attributes {stable_mosaic.version = 11 : i64} {
  func.func @_nsl_kernel(%arg0: i32, %arg1: memref<32x2816xf32, #tpu.memory_space<vmem>>, %arg2: memref<2816x88xf32, #tpu.memory_space<vmem>>, %arg3: memref<8x32xf32, #tpu.memory_space<vmem>>, %arg4: memref<8x2816xf32, #tpu.memory_space<vmem>>, %arg5: memref<8x1xf32, #tpu.memory_space<vmem>>, %arg6: memref<1x1x88xf32, #tpu.memory_space<vmem>>) attributes {dimension_semantics = [#tpu.dimension_semantics<parallel>], iteration_bounds = array<i64: 1>, scalar_prefetch = 0 : i64, scratch_operands = 0 : i64, tpu.core_type = #tpu.core_type<tc>, window_params = [{pipeline_mode = #tpu.pipeline_mode<synchronous>, transform_indices = @transform_0, window_bounds = array<i64: 32, 2816>}, {pipeline_mode = #tpu.pipeline_mode<synchronous>, transform_indices = @transform_1, window_bounds = array<i64: 2816, 88>}, {transform_indices = @transform_2, window_bounds = array<i64: 8, 32>}, {transform_indices = @transform_3, window_bounds = array<i64: 8, 2816>}, {transform_indices = @transform_4, window_bounds = array<i64: 8, 1>}, {transform_indices = @transform_5, window_bounds = array<i64: 1, 1, 88>}]} {
    %c0 = arith.constant 0 : index
    %c0_0 = arith.constant 0 : index
    %0 = vector.load %arg3[%c0, %c0_0] : memref<8x32xf32, #tpu.memory_space<vmem>>, vector<8x32xf32>
    %c0_1 = arith.constant 0 : index
    %c0_2 = arith.constant 0 : index
    %1 = vector.load %arg1[%c0_1, %c0_2] : memref<32x2816xf32, #tpu.memory_space<vmem>>, vector<32x2816xf32>
    %cst = arith.constant dense<0.000000e+00> : vector<8x2816xf32>
    %2 = tpu.matmul %0, %1, %cst {dimension_numbers = #tpu.dot_dimension_numbers<[1], [0], [0], [1], [0, 0, 1, 1], [], []>} : vector<8x32xf32>, vector<32x2816xf32>, vector<8x2816xf32> -> vector<8x2816xf32>
    %c0_3 = arith.constant 0 : index
    %c0_4 = arith.constant 0 : index
    %3 = vector.load %arg4[%c0_3, %c0_4] : memref<8x2816xf32, #tpu.memory_space<vmem>>, vector<8x2816xf32>
    %4 = arith.mulf %3, %2 : vector<8x2816xf32>
    %c0_5 = arith.constant 0 : index
    %c0_6 = arith.constant 0 : index
    %5 = vector.load %arg2[%c0_5, %c0_6] : memref<2816x88xf32, #tpu.memory_space<vmem>>, vector<2816x88xf32>
    %cst_7 = arith.constant dense<0.000000e+00> : vector<8x88xf32>
    %6 = tpu.matmul %4, %5, %cst_7 {dimension_numbers = #tpu.dot_dimension_numbers<[1], [0], [0], [1], [0, 0, 1, 1], [], []>} : vector<8x2816xf32>, vector<2816x88xf32>, vector<8x88xf32> -> vector<8x88xf32>
    %cst_8 = arith.constant 0.000000e+00 : f32
    %7 = vector.broadcast %cst_8 : f32 to vector<8x88xf32>
    %8 = arith.minimumf %6, %7 : vector<8x88xf32>
    %9 = math.absf %6 : vector<8x88xf32>
    %cst_9 = arith.constant 0.000000e+00 : f32
    %10 = vector.broadcast %cst_9 : f32 to vector<8x88xf32>
    %11 = arith.subf %10, %9 : vector<8x88xf32>
    %12 = math.exp %11 : vector<8x88xf32>
    %cst_10 = arith.constant 1.000000e+00 : f32
    %13 = vector.broadcast %cst_10 : f32 to vector<8x88xf32>
    %14 = arith.addf %13, %12 : vector<8x88xf32>
    %15 = math.log %14 : vector<8x88xf32>
    %16 = arith.subf %8, %15 : vector<8x88xf32>
    %cst_11 = arith.constant -20.7232666 : f32
    %17 = vector.broadcast %cst_11 : f32 to vector<8x88xf32>
    %18 = arith.maximumf %16, %17 : vector<8x88xf32>
    %c0_12 = arith.constant 0 : index
    %c0_13 = arith.constant 0 : index
    %19 = vector.load %arg5[%c0_12, %c0_13] : memref<8x1xf32, #tpu.memory_space<vmem>>, vector<8x1xf32>
    %20 = vector.broadcast %19 : vector<8x1xf32> to vector<8x88xf32>
    %21 = arith.mulf %18, %20 : vector<8x88xf32>
    %cst_14 = arith.constant dense<0.000000e+00> : vector<88xf32>
    %22 = vector.multi_reduction <add>, %21, %cst_14 [0] : vector<8x88xf32> to vector<88xf32>
    %23 = vector.shape_cast %22 : vector<88xf32> to vector<1x88xf32>
    %c0_15 = arith.constant 0 : index
    %c0_16 = arith.constant 0 : index
    %c0_17 = arith.constant 0 : index
    %24 = vector.load %arg6[%c0_15, %c0_16, %c0_17] : memref<1x1x88xf32, #tpu.memory_space<vmem>>, vector<1x1x88xf32>
    %25 = vector.shape_cast %24 : vector<1x1x88xf32> to vector<1x88xf32>
    %26 = vector.shape_cast %23 : vector<1x88xf32> to vector<1x1x88xf32>
    tpu.vector_store %arg6[%c0_15, %c0_16, %c0_17], %26 {strides = array<i32>} : memref<1x1x88xf32, #tpu.memory_space<vmem>>, vector<1x1x88xf32>,
    return
  }
  func.func @transform_0(%arg0: i32) -> (i32, i32) {
    %c0_i32 = arith.constant 0 : i32
    %c0_i32_0 = arith.constant 0 : i32
    %c0_i32_1 = arith.constant 0 : i32
    return %c0_i32, %c0_i32_0 : i32, i32
  }
  func.func @transform_1(%arg0: i32) -> (i32, i32) {
    %c0_i32 = arith.constant 0 : i32
    %c0_i32_0 = arith.constant 0 : i32
    %c0_i32_1 = arith.constant 0 : i32
    return %c0_i32, %c0_i32_0 : i32, i32
  }
  func.func @transform_2(%arg0: i32) -> (i32, i32) {
    %c0_i32 = arith.constant 0 : i32
    %c0_i32_0 = arith.constant 0 : i32
    return %arg0, %c0_i32 : i32, i32
  }
  func.func @transform_3(%arg0: i32) -> (i32, i32) {
    %c0_i32 = arith.constant 0 : i32
    %c0_i32_0 = arith.constant 0 : i32
    return %arg0, %c0_i32 : i32, i32
  }
  func.func @transform_4(%arg0: i32) -> (i32, i32) {
    %c0_i32 = arith.constant 0 : i32
    %c0_i32_0 = arith.constant 0 : i32
    return %arg0, %c0_i32 : i32, i32
  }
  func.func @transform_5(%arg0: i32) -> (i32, i32, i32) {
    %c0_i32 = arith.constant 0 : i32
    %c0_i32_0 = arith.constant 0 : i32
    %c0_i32_1 = arith.constant 0 : i32
    return %arg0, %c0_i32, %c0_i32_0 : i32, i32, i32
  }
}

</mosaic_0001>

<bundles_post_ra>
// kernel: tpu_custom_call.1
= control target key start
LH: loop header
LB: loop body
LE: loop exit
PB: predicated region body
PF: predicated region fallthrough
CT: control target
= control target key end

     0   :  { %v2528_v4 = vmov 0.0   ;;  %vm110_vm0 = vcmask 261120   ;;  %s3994_s0 = inlined_call_operand.vmem [shape: f32[32,2816], index: 0, kind: input, shape index: {}]   ;;  %s3995_s1 = inlined_call_operand.vmem [shape: f32[2816,88], index: 1, kind: input, shape index: {}]   ;;  %s3996_s2 = inlined_call_operand.vmem [shape: f32[8,32], index: 2, kind: input, shape index: {}]   ;;  %s3997_s3 = inlined_call_operand.vmem [shape: f32[8,2816], index: 3, kind: input, shape index: {}]   ;;  %s3998_s4 = inlined_call_operand.vmem [shape: f32[8,1], index: 4, kind: input, shape index: {}]   ;;  %s3999_s5 = inlined_call_operand.hbm [shape: f32[1,1,88], index: 5, kind: output, shape index: {}]  }
   0x1   :  { %v89_v0 = vld [vmem:[%s3994_s0 + $0x218] sm:$0xff]  ;;  %v88_v1 = vld [vmem:[%s3994_s0 + $0x210] sm:$0xff]  ;;  %v67_v2 = vld [vmem:[%s3994_s0 + $0x168] sm:$0xff]  ;;  %178 = vmatprep.mubr.f32.mxu0 %v2528_v4  ;;  %391 = vmatprep.mubr.f32.mxu1 %v2528_v4 }
   0x2   :  { %138 = vmatprep.subr.mxu0 %v89_v0  ;;  %v66_v3 = vld [vmem:[%s3994_s0 + $0x160] sm:$0xff]  ;;  %v45_v5 = vld [vmem:[%s3994_s0 + $0xb8] sm:$0xff]  ;;  %v44_v6 = vld [vmem:[%s3994_s0 + $0xb0] sm:$0xff] }
   0x3   :  { %139 = vmatpush1.msra.mxu0 %v88_v1  ;;  %v23_v7 = vld [vmem:[%s3994_s0 + $0x8] sm:$0xff]  ;;  %v22_v8 = vld [vmem:[%s3994_s0] sm:$0xff]  ;;  %v69_v12 = vld [vmem:[%s3994_s0 + $0x178] sm:$0xff] }
   0x4   :  { %140 = vmatprep.subr.mxu0 %v67_v2  ;;  %v2590_v9 = vld [vmem:[%s3996_s2] sm:$0xff]  ;;  %v91_v10 = vld [vmem:[%s3994_s0 + $0x228] sm:$0xff]  ;;  %v68_v14 = vld [vmem:[%s3994_s0 + $0x170] sm:$0xff] }
   0x5   :  { %141 = vmatpush1.msra.mxu0 %v66_v3  ;;  %v90_v11 = vld [vmem:[%s3994_s0 + $0x220] sm:$0xff]  ;;  %v95_v13 = vld [vmem:[%s3994_s0 + $0x248] sm:$0xff]  ;;  %v73_v17 = vld [vmem:[%s3994_s0 + $0x198] sm:$0xff] }
   0x6   :  { %142 = vmatprep.subr.mxu0 %v45_v5  ;;  %v94_v15 = vld [vmem:[%s3994_s0 + $0x240] sm:$0xff]  ;;  %v47_v16 = vld [vmem:[%s3994_s0 + $0xc8] sm:$0xff]  ;;  %351 = vmatprep.subr.mxu1 %v95_v13  ;;  %v72_v19 = vld [vmem:[%s3994_s0 + $0x190] sm:$0xff] }
   0x7   :  { %143 = vmatpush1.msra.mxu0 %v44_v6  ;;  %v46_v18 = vld [vmem:[%s3994_s0 + $0xc0] sm:$0xff]  ;;  %v25_v20 = vld [vmem:[%s3994_s0 + $0x18] sm:$0xff]  ;;  %352 = vmatpush1.msra.mxu1 %v94_v15  ;;  %v51_v21 = vld [vmem:[%s3994_s0 + $0xe8] sm:$0xff] }
   0x8   :  { %144 = vmatprep.subr.mxu0 %v23_v7  ;;  %v24_v22 = vld [vmem:[%s3994_s0 + $0x10] sm:$0xff]  ;;  %353 = vmatprep.subr.mxu1 %v73_v17  ;;  %v50_v23 = vld [vmem:[%s3994_s0 + $0xe0] sm:$0xff]  ;;  %v93_v24 = vld [vmem:[%s3994_s0 + $0x238] sm:$0xff] }
   0x9   :  { %145 = vmatpush1.msra.mxu0 %v22_v8  ;;  %354 = vmatpush1.msra.mxu1 %v72_v19  ;;  %v92_v25 = vld [vmem:[%s3994_s0 + $0x230] sm:$0xff]  ;;  %v71_v26 = vld [vmem:[%s3994_s0 + $0x188] sm:$0xff]  ;;  %v29_v27 = vld [vmem:[%s3994_s0 + $0x38] sm:$0xff] }
   0xa   :  { %2102 = vmatmul.mubr.msk.f32.vlgmr.msra.gmra.mxu0 %vm110_vm0, %v2590_v9  ;;  %209 = vmatprep.subr.mxu0 %v91_v10  ;;  %v70_v28 = vld [vmem:[%s3994_s0 + $0x180] sm:$0xff]  ;;  %v28_v29 = vld [vmem:[%s3994_s0 + $0x30] sm:$0xff]  ;;  %v49_v30 = vld [vmem:[%s3994_s0 + $0xd8] sm:$0xff] }
   0xb   :  { %210 = vmatpush1.msra.mxu0 %v90_v11  ;;  %249 = vmatprep.mubr.f32.mxu0 %v2528_v4  ;;  %v48_v31 = vld [vmem:[%s3994_s0 + $0xd0] sm:$0xff]  ;;  %v99_v32 = vld [vmem:[%s3994_s0 + $0x268] sm:$0xff]  ;;  %v98_v34 = vld [vmem:[%s3994_s0 + $0x260] sm:$0xff] }
   0xc   :  { %211 = vmatprep.subr.mxu0 %v69_v12  ;;  %355 = vmatprep.subr.mxu1 %v51_v21  ;;  %v27_v33 = vld [vmem:[%s3994_s0 + $0x28] sm:$0xff]  ;;  %v26_v35 = vld [vmem:[%s3994_s0 + $0x20] sm:$0xff]  ;;  %v77_v36 = vld [vmem:[%s3994_s0 + $0x1b8] sm:$0xff] }
   0xd   :  { %212 = vmatpush1.msra.mxu0 %v68_v14  ;;  %356 = vmatpush1.msra.mxu1 %v50_v23  ;;  %v97_v37 = vld [vmem:[%s3994_s0 + $0x258] sm:$0xff]  ;;  %v96_v38 = vld [vmem:[%s3994_s0 + $0x250] sm:$0xff]  ;;  %v75_v39 = vld [vmem:[%s3994_s0 + $0x1a8] sm:$0xff] }
   0xe   :  { %213 = vmatprep.subr.mxu0 %v47_v16  ;;  %357 = vmatprep.subr.mxu1 %v29_v27  ;;  %v76_v40 = vld [vmem:[%s3994_s0 + $0x1b0] sm:$0xff]  ;;  %v74_v41 = vld [vmem:[%s3994_s0 + $0x1a0] sm:$0xff]  ;;  %v55_v42 = vld [vmem:[%s3994_s0 + $0x108] sm:$0xff] }
   0xf   :  { %214 = vmatpush1.msra.mxu0 %v46_v18  ;;  %358 = vmatpush1.msra.mxu1 %v28_v29  ;;  %v53_v43 = vld [vmem:[%s3994_s0 + $0xf8] sm:$0xff]  ;;  %v54_v44 = vld [vmem:[%s3994_s0 + $0x100] sm:$0xff]  ;;  %v52_v45 = vld [vmem:[%s3994_s0 + $0xf0] sm:$0xff] }
  0x10   :  { %215 = vmatprep.subr.mxu0 %v25_v20  ;;  %2105 = vmatmul.mubr.msk.f32.vlgmr.msra.gmra.mxu1 %vm110_vm0, %v2590_v9  ;;  %v33_v46 = vld [vmem:[%s3994_s0 + $0x58] sm:$0xff]  ;;  %v31_v47 = vld [vmem:[%s3994_s0 + $0x48] sm:$0xff]  ;;  %v32_v48 = vld [vmem:[%s3994_s0 + $0x50] sm:$0xff] }
  0x11   :  { %216 = vmatpush1.msra.mxu0 %v24_v22  ;;  %493 = vmatprep.subr.mxu1 %v99_v32  ;;  %v30_v49 = vld [vmem:[%s3994_s0 + $0x40] sm:$0xff]  ;;  %v101_v50 = vld [vmem:[%s3994_s0 + $0x278] sm:$0xff]  ;;  %v100_v51 = vld [vmem:[%s3994_s0 + $0x270] sm:$0xff] }
  0x12   :  { %2103 = vmatmul.mubr.msk.f32.vlgmr.msra.gmra.mxu0 %vm110_vm0, %v2590_v9  ;;  %280 = vmatprep.subr.mxu0 %v93_v24  ;;  %v103_v52 = vld [vmem:[%s3994_s0 + $0x288] sm:$0xff]  ;;  %v102_v54 = vld [vmem:[%s3994_s0 + $0x280] sm:$0xff]  ;;  %v81_v56 = vld [vmem:[%s3994_s0 + $0x1d8] sm:$0xff] }
  0x13   :  { %281 = vmatpush1.msra.mxu0 %v92_v25  ;;  %320 = vmatprep.mubr.f32.mxu0 %v2528_v4  ;;  %v79_v53 = vld [vmem:[%s3994_s0 + $0x1c8] sm:$0xff]  ;;  %v78_v55 = vld [vmem:[%s3994_s0 + $0x1c0] sm:$0xff]  ;;  %v57_v57 = vld [vmem:[%s3994_s0 + $0x118] sm:$0xff] }
  0x14   :  { %282 = vmatprep.subr.mxu0 %v71_v26  ;;  %494 = vmatpush1.msra.mxu1 %v98_v34  ;;  %v80_v58 = vld [vmem:[%s3994_s0 + $0x1d0] sm:$0xff]  ;;  %v59_v60 = vld [vmem:[%s3994_s0 + $0x128] sm:$0xff]  ;;  %v58_v62 = vld [vmem:[%s3994_s0 + $0x120] sm:$0xff] }
  0x15   :  { %283 = vmatpush1.msra.mxu0 %v70_v28  ;;  %495 = vmatprep.subr.mxu1 %v77_v36  ;;  %v56_v59 = vld [vmem:[%s3994_s0 + $0x110] sm:$0xff]  ;;  %v35_v61 = vld [vmem:[%s3994_s0 + $0x68] sm:$0xff]  ;;  %v34_v63 = vld [vmem:[%s3994_s0 + $0x60] sm:$0xff] }
  0x16   :  { %284 = vmatprep.subr.mxu0 %v49_v30  ;;  %496 = vmatpush1.msra.mxu1 %v76_v40  ;;  %v37_v0 = vld [vmem:[%s3994_s0 + $0x78] sm:$0xff]  ;;  %v36_v1 = vld [vmem:[%s3994_s0 + $0x70] sm:$0xff]  ;;  %v83_v5 = vld [vmem:[%s3994_s0 + $0x1e8] sm:$0xff] }
  0x17   :  { %285 = vmatpush1.msra.mxu0 %v48_v31  ;;  %497 = vmatprep.subr.mxu1 %v55_v42  ;;  %v105_v2 = vld [vmem:[%s3994_s0 + $0x298] sm:$0xff]  ;;  %v104_v3 = vld [vmem:[%s3994_s0 + $0x290] sm:$0xff]  ;;  %v82_v6 = vld [vmem:[%s3994_s0 + $0x1e0] sm:$0xff] }
  0x18   :  { %286 = vmatprep.subr.mxu0 %v27_v33  ;;  %498 = vmatpush1.msra.mxu1 %v54_v44  ;;  %v107_v7 = vld [vmem:[%s3994_s0 + $0x2a8] sm:$0xff]  ;;  %v61_v8 = vld [vmem:[%s3994_s0 + $0x138] sm:$0xff]  ;;  %v106_v10 = vld [vmem:[%s3994_s0 + $0x2a0] sm:$0xff] }
  0x19   :  { %287 = vmatpush1.msra.mxu0 %v26_v35  ;;  %499 = vmatprep.subr.mxu1 %v33_v46  ;;  %v60_v11 = vld [vmem:[%s3994_s0 + $0x130] sm:$0xff]  ;;  %v85_v12 = vld [vmem:[%s3994_s0 + $0x1f8] sm:$0xff] }
  0x1a   :  { %2104 = vmatmul.mubr.msk.f32.vlgmr.msra.gmra.mxu0 %vm110_vm0, %v2590_v9  ;;  %422 = vmatprep.subr.mxu0 %v97_v37 }
  0x1b   :  { %423 = vmatpush1.msra.mxu0 %v96_v38  ;;  %462 = vmatprep.mubr.f32.mxu0 %v2528_v4 }
  0x1c   :  { %424 = vmatprep.subr.mxu0 %v75_v39  ;;  %500 = vmatpush1.msra.mxu1 %v32_v48 }
  0x1d   :  { %425 = vmatpush1.msra.mxu0 %v74_v41  ;;  %533 = vmatprep.mubr.f32.mxu1 %v2528_v4 }
  0x1e   :  { %426 = vmatprep.subr.mxu0 %v53_v43  ;;  %2107 = vmatmul.mubr.msk.f32.vlgmr.msra.gmra.mxu1 %vm110_vm0, %v2590_v9 }
  0x1f   :  { %427 = vmatpush1.msra.mxu0 %v52_v45  ;;  %635 = vmatprep.subr.mxu1 %v103_v52 }
  0x20   :  { %428 = vmatprep.subr.mxu0 %v31_v47  ;;  %636 = vmatpush1.msra.mxu1 %v102_v54 }
  0x21   :  { %429 = vmatpush1.msra.mxu0 %v30_v49  ;;  %637 = vmatprep.subr.mxu1 %v81_v56 }
  0x22   :  { %2106 = vmatmul.mubr.msk.f32.vlgmr.msra.gmra.mxu0 %vm110_vm0, %v2590_v9  ;;  %564 = vmatprep.subr.mxu0 %v101_v50 }
  0x23   :  { %604 = vmatprep.mubr.f32.mxu0 %v2528_v4  ;;  %565 = vmatpush1.msra.mxu0 %v100_v51 }
  0x24   :  { %566 = vmatprep.subr.mxu0 %v79_v53  ;;  %638 = vmatpush1.msra.mxu1 %v80_v58 }
  0x25   :  { %567 = vmatpush1.msra.mxu0 %v78_v55  ;;  %639 = vmatprep.subr.mxu1 %v59_v60 }
  0x26   :  { %568 = vmatprep.subr.mxu0 %v57_v57  ;;  %640 = vmatpush1.msra.mxu1 %v58_v62 }
  0x27   :  { %569 = vmatpush1.msra.mxu0 %v56_v59  ;;  %641 = vmatprep.subr.mxu1 %v37_v0 }
  0x28   :  { %570 = vmatprep.subr.mxu0 %v35_v61  ;;  %642 = vmatpush1.msra.mxu1 %v36_v1 }
  0x29   :  { %571 = vmatpush1.msra.mxu0 %v34_v63  ;;  %675 = vmatprep.mubr.f32.mxu1 %v2528_v4 }
  0x2a   :  { %2108 = vmatmul.mubr.msk.f32.vlgmr.msra.gmra.mxu0 %vm110_vm0, %v2590_v9  ;;  %706 = vmatprep.subr.mxu0 %v105_v2 }
  0x2b   :  { %2109 = vmatmul.mubr.msk.f32.vlgmr.msra.gmra.mxu1 %vm110_vm0, %v2590_v9  ;;  %707 = vmatpush1.msra.mxu0 %v104_v3 }
  0x2c   :  { %708 = vmatprep.subr.mxu0 %v83_v5  ;;  %746 = vmatprep.mubr.f32.mxu0 %v2528_v4 }
  0x2d   :  { %10 = vsyncpa [#allocation3], 0  ;;  %709 = vmatpush1.msra.mxu0 %v82_v6  ;;  %v39_v13 = vld [vmem:[%s3994_s0 + $0x88] sm:$0xff]  ;;  %777 = vmatprep.subr.mxu1 %v107_v7  ;;  %v84_v14 = vld [vmem:[%s3994_s0 + $0x1f0] sm:$0xff]  ;;  %vm2078_vm1 = vcmask 719872   ;;  %vm2086_vm2 = vcmask 712704  }
  0x2e   :  { %710 = vmatprep.subr.mxu0 %v61_v8  ;;  %v38_v15 = vld [vmem:[%s3994_s0 + $0x80] sm:$0xff]  ;;  %778 = vmatpush1.msra.mxu1 %v106_v10  ;;  %v63_v16 = vld [vmem:[%s3994_s0 + $0x148] sm:$0xff]  ;;  %v41_v18 = vld [vmem:[%s3994_s0 + $0x98] sm:$0xff] }
  0x2f   :  { %711 = vmatpush1.msra.mxu0 %v60_v11  ;;  %779 = vmatprep.subr.mxu1 %v85_v12  ;;  %v62_v17 = vld [vmem:[%s3994_s0 + $0x140] sm:$0xff]  ;;  %v40_v19 = vld [vmem:[%s3994_s0 + $0x90] sm:$0xff]  ;;  %v109_v20 = vld [vmem:[%s3994_s0 + $0x2b8] sm:$0xff] }
  0x30   :  { %712 = vmatprep.subr.mxu0 %v39_v13  ;;  %780 = vmatpush1.msra.mxu1 %v84_v14  ;;  %v108_v21 = vld [vmem:[%s3994_s0 + $0x2b0] sm:$0xff]  ;;  %v87_v22 = vld [vmem:[%s3994_s0 + $0x208] sm:$0xff]  ;;  %v86_v23 = vld [vmem:[%s3994_s0 + $0x200] sm:$0xff] }
  0x31   :  { %713 = vmatpush1.msra.mxu0 %v38_v15  ;;  %781 = vmatprep.subr.mxu1 %v63_v16  ;;  %v970_v24 = vld [vmem:[%s3995_s1 + $0xf8] sm:$0xff]  ;;  %v64_v27 = vld [vmem:[%s3994_s0 + $0x150] sm:$0xff]  ;;  %v43_v29 = vld [vmem:[%s3994_s0 + $0xa8] sm:$0xff] }
  0x32   :  { %2110 = vmatmul.mubr.msk.f32.vlgmr.msra.gmra.mxu0 %vm110_vm0, %v2590_v9  ;;  %782 = vmatpush1.msra.mxu1 %v62_v17  ;;  %v65_v25 = vld [vmem:[%s3994_s0 + $0x158] sm:$0xff]  ;;  %v969_v28 = vld [vmem:[%s3995_s1 + $0xf0] sm:$0xff]  ;;  %v42_v31 = vld [vmem:[%s3994_s0 + $0xa0] sm:$0xff] }
  0x33   :  { %783 = vmatprep.subr.mxu1 %v41_v18  ;;  %817 = vmatprep.mubr.f32.mxu1 %v2528_v4  ;;  %v954_v26 = vld [vmem:[%s3995_s1 + $0x78] sm:$0xff]  ;;  %v953_v30 = vld [vmem:[%s3995_s1 + $0x70] sm:$0xff]  ;;  %v952_v32 = vld [vmem:[%s3995_s1 + $0x68] sm:$0xff] }
  0x34   :  { %784 = vmatpush1.msra.mxu1 %v40_v19  ;;  %848 = vmatprep.subr.mxu0 %v109_v20  ;;  %v967_v33 = vld [vmem:[%s3995_s1 + $0xe0] sm:$0xff]  ;;  %v1002_v34 = vld [vmem:[%s3995_s1 + $0x1f8] sm:$0xff]  ;;  %v1001_v38 = vld [vmem:[%s3995_s1 + $0x1f0] sm:$0xff] }
  0x35   :  { %2111 = vmatmul.mubr.msk.f32.vlgmr.msra.gmra.mxu1 %vm110_vm0, %v2590_v9  ;;  %849 = vmatpush1.msra.mxu0 %v108_v21  ;;  %v951_v35 = vld [vmem:[%s3995_s1 + $0x60] sm:$0xff]  ;;  %v986_v36 = vld [vmem:[%s3995_s1 + $0x178] sm:$0xff]  ;;  %v985_v40 = vld [vmem:[%s3995_s1 + $0x170] sm:$0xff] }
  0x36   :  { %850 = vmatprep.subr.mxu0 %v87_v22  ;;  %888 = vmatprep.mubr.f32.mxu0 %v2528_v4  ;;  %v968_v4 = vld [vmem:[%s3995_s1 + $0xe8] sm:$0xff]  ;;  %v966_v37 = vld [vmem:[%s3995_s1 + $0xd8] sm:$0xff]  ;;  %v949_v42 = vld [vmem:[%s3995_s1 + $0x50] sm:$0xff] }
  0x37   :  { %851 = vmatpush1.msra.mxu0 %v86_v23  ;;  %2113 = vmatprep.subr.mxu1 %v970_v24  ;;  %v950_v39 = vld [vmem:[%s3995_s1 + $0x58] sm:$0xff]  ;;  %v1000_v41 = vld [vmem:[%s3995_s1 + $0x1e8] sm:$0xff]  ;;  %v999_v45 = vld [vmem:[%s3995_s1 + $0x1e0] sm:$0xff] }
  0x38   :  { %852 = vmatprep.subr.mxu0 %v65_v25  ;;  %2114 = vmatpush3.msra.mxu1 %v954_v26  ;;  %v984_v43 = vld [vmem:[%s3995_s1 + $0x168] sm:$0xff]  ;;  %v983_v47 = vld [vmem:[%s3995_s1 + $0x160] sm:$0xff]  ;;  %v998_v49 = vld [vmem:[%s3995_s1 + $0x1d8] sm:$0xff] }
  0x39   :  { %853 = vmatpush1.msra.mxu0 %v64_v27  ;;  %2115 = vmatprep.subr.mxu1 %v969_v28  ;;  %v964_v44 = vld [vmem:[%s3995_s1 + $0xc8] sm:$0xff]  ;;  %v963_v48 = vld [vmem:[%s3995_s1 + $0xc0] sm:$0xff]  ;;  %v982_v51 = vld [vmem:[%s3995_s1 + $0x158] sm:$0xff] }
  0x3a   :  { %854 = vmatprep.subr.mxu0 %v43_v29  ;;  %2116 = vmatpush3.msra.mxu1 %v953_v30  ;;  %v948_v46 = vld [vmem:[%s3995_s1 + $0x48] sm:$0xff]  ;;  %v947_v50 = vld [vmem:[%s3995_s1 + $0x40] sm:$0xff]  ;;  %v962_v52 = vld [vmem:[%s3995_s1 + $0xb8] sm:$0xff] }
  0x3b   :  { %855 = vmatpush1.msra.mxu0 %v42_v31  ;;  %2117 = vmatprep.subr.mxu1 %v968_v4  ;;  %v997_v53 = vld [vmem:[%s3995_s1 + $0x1d0] sm:$0xff]  ;;  %v946_v54 = vld [vmem:[%s3995_s1 + $0x38] sm:$0xff]  ;;  %v996_v57 = vld [vmem:[%s3995_s1 + $0x1c8] sm:$0xff] }
  0x3c   :  { %2112 = vmatmul.mubr.msk.f32.vlgmr.msra.gmra.mxu0 %vm110_vm0, %v2590_v9  ;;  %2118 = vmatpush3.msra.mxu1 %v952_v32  ;;  %v965_v9 = vld [vmem:[%s3995_s1 + $0xd0] sm:$0xff]  ;;  %v980_v59 = vld [vmem:[%s3995_s1 + $0x148] sm:$0xff]  ;;  %v995_v61 = vld [vmem:[%s3995_s1 + $0x1c0] sm:$0xff] }
  0x3d   :  { %2119 = vmatprep.subr.mxu1 %v967_v33  ;;  %2148 = vmatprep.subr.mxu0 %v1002_v34  ;;  %v981_v55 = vld [vmem:[%s3995_s1 + $0x150] sm:$0xff]  ;;  %v960_v60 = vld [vmem:[%s3995_s1 + $0xa8] sm:$0xff]  ;;  %v979_v63 = vld [vmem:[%s3995_s1 + $0x140] sm:$0xff] }
  0x3e   :  { %2120 = vmatpush3.msra.mxu1 %v951_v35  ;;  %2149 = vmatpush3.msra.mxu0 %v986_v36  ;;  %v961_v56 = vld [vmem:[%s3995_s1 + $0xb0] sm:$0xff]  ;;  %v944_v62 = vld [vmem:[%s3995_s1 + $0x28] sm:$0xff]  ;;  %v959_v0 = vld [vmem:[%s3995_s1 + $0xa0] sm:$0xff] }
  0x3f   :  { %2121 = vmatprep.subr.mxu1 %v966_v37  ;;  %2150 = vmatprep.subr.mxu0 %v1001_v38  ;;  %v945_v58 = vld [vmem:[%s3995_s1 + $0x30] sm:$0xff]  ;;  %v994_v1 = vld [vmem:[%s3995_s1 + $0x1b8] sm:$0xff]  ;;  %v943_v2 = vld [vmem:[%s3995_s1 + $0x20] sm:$0xff] }
  0x40   :  { %2122 = vmatpush3.msra.mxu1 %v950_v39  ;;  %2151 = vmatpush3.msra.mxu0 %v985_v40  ;;  %v978_v3 = vld [vmem:[%s3995_s1 + $0x138] sm:$0xff]  ;;  %v993_v6 = vld [vmem:[%s3995_s1 + $0x1b0] sm:$0xff]  ;;  %v992_v11 = vld [vmem:[%s3995_s1 + $0x1a8] sm:$0xff] }
  0x41   :  { %2123 = vmatprep.subr.mxu1 %v965_v9  ;;  %2152 = vmatprep.subr.mxu0 %v1000_v41  ;;  %v958_v5 = vld [vmem:[%s3995_s1 + $0x98] sm:$0xff]  ;;  %v977_v8 = vld [vmem:[%s3995_s1 + $0x130] sm:$0xff]  ;;  %v976_v13 = vld [vmem:[%s3995_s1 + $0x128] sm:$0xff] }
  0x42   :  { %2124 = vmatpush3.msra.mxu1 %v949_v42  ;;  %2153 = vmatpush3.msra.mxu0 %v984_v43  ;;  %v942_v7 = vld [vmem:[%s3995_s1 + $0x18] sm:$0xff]  ;;  %v957_v10 = vld [vmem:[%s3995_s1 + $0x90] sm:$0xff]  ;;  %v956_v14 = vld [vmem:[%s3995_s1 + $0x88] sm:$0xff] }
  0x43   :  { %2125 = vmatprep.subr.mxu1 %v964_v44  ;;  %2154 = vmatprep.subr.mxu0 %v999_v45  ;;  %v941_v12 = vld [vmem:[%s3995_s1 + $0x10] sm:$0xff]  ;;  %v991_v15 = vld [vmem:[%s3995_s1 + $0x1a0] sm:$0xff]  ;;  %v940_v16 = vld [vmem:[%s3995_s1 + $0x8] sm:$0xff] }
  0x44   :  { %2126 = vmatpush3.msra.mxu1 %v948_v46  ;;  %2155 = vmatpush3.msra.mxu0 %v983_v47  ;;  %v975_v17 = vld [vmem:[%s3995_s1 + $0x120] sm:$0xff]  ;;  %v990_v19 = vld [vmem:[%s3995_s1 + $0x198] sm:$0xff]  ;;  %v989_v23 = vld [vmem:[%s3995_s1 + $0x190] sm:$0xff] }
  0x45   :  { %2127 = vmatprep.subr.mxu1 %v963_v48  ;;  %2156 = vmatprep.subr.mxu0 %v998_v49  ;;  %v955_v18 = vld [vmem:[%s3995_s1 + $0x80] sm:$0xff]  ;;  %v974_v21 = vld [vmem:[%s3995_s1 + $0x118] sm:$0xff]  ;;  %v973_v24 = vld [vmem:[%s3995_s1 + $0x110] sm:$0xff] }
  0x46   :  { %2128 = vmatpush3.msra.mxu1 %v947_v50  ;;  %2157 = vmatpush3.msra.mxu0 %v982_v51  ;;  %v939_v20 = vld [vmem:[%s3995_s1] sm:$0xff]  ;;  %v1034_v22 = vld [vmem:[%s3995_s1 + $0x2f8] sm:$0xff]  ;;  %v988_v25 = vld [vmem:[%s3995_s1 + $0x188] sm:$0xff] }
  0x47   :  { %2129 = vmatprep.subr.mxu1 %v962_v52  ;;  %2158 = vmatprep.subr.mxu0 %v997_v53  ;;  %v972_v26 = vld [vmem:[%s3995_s1 + $0x108] sm:$0xff]  ;;  %v987_v27 = vld [vmem:[%s3995_s1 + $0x180] sm:$0xff]  ;;  %v1066_v29 = vld [vmem:[%s3995_s1 + $0x3f8] sm:$0xff] }
  0x48   :  { %2130 = vmatpush3.msra.mxu1 %v946_v54  ;;  %2159 = vmatpush3.msra.mxu0 %v981_v55  ;;  %v971_v28 = vld [vmem:[%s3995_s1 + $0x100] sm:$0xff]  ;;  %v896_v31 = vld [vmem:[%s3997_s3 + $0x8] sm:$0xff]  ;;  %v1018_v35 = vld [vmem:[%s3995_s1 + $0x278] sm:$0xff] }
  0x49   :  { %2131 = vmatprep.subr.mxu1 %v961_v56  ;;  %2160 = vmatprep.subr.mxu0 %v996_v57  ;;  %v895_v4 = vld [vmem:[%s3997_s3] sm:$0xff]  ;;  %v1033_v36 = vld [vmem:[%s3995_s1 + $0x2f0] sm:$0xff]  ;;  %v1032_v39 = vld [vmem:[%s3995_s1 + $0x2e8] sm:$0xff] }
  0x4a   :  { %2132 = vmatpush3.msra.mxu1 %v945_v58  ;;  %2161 = vmatpush3.msra.mxu0 %v980_v59  ;;  %v1017_v37 = vld [vmem:[%s3995_s1 + $0x270] sm:$0xff]  ;;  %v898_v9 = vld [vmem:[%s3997_s3 + $0x18] sm:$0xff]  ;;  %v1016_v41 = vld [vmem:[%s3995_s1 + $0x268] sm:$0xff] }
  0x4b   :  { %2133 = vmatprep.subr.mxu1 %v960_v60  ;;  %2162 = vmatprep.subr.mxu0 %v995_v61  ;;  %v897_v38 = vld [vmem:[%s3997_s3 + $0x10] sm:$0xff]  ;;  %v1031_v42 = vld [vmem:[%s3995_s1 + $0x2e0] sm:$0xff]  ;;  %v1030_v47 = vld [vmem:[%s3995_s1 + $0x2d8] sm:$0xff] }
  0x4c   :  { %2134 = vmatpush3.msra.mxu1 %v944_v62  ;;  %2163 = vmatpush3.msra.mxu0 %v979_v63  ;;  %v1015_v45 = vld [vmem:[%s3995_s1 + $0x260] sm:$0xff]  ;;  %v1014_v48 = vld [vmem:[%s3995_s1 + $0x258] sm:$0xff]  ;;  %v1029_v50 = vld [vmem:[%s3995_s1 + $0x2d0] sm:$0xff] }
  0x4d   :  { %2135 = vmatprep.subr.mxu1 %v959_v0  ;;  %2164 = vmatprep.subr.mxu0 %v994_v1  ;;  %v1050_v49 = vld [vmem:[%s3995_s1 + $0x378] sm:$0xff]  ;;  %v1065_v51 = vld [vmem:[%s3995_s1 + $0x3f0] sm:$0xff]  ;;  %v1028_v54 = vld [vmem:[%s3995_s1 + $0x2c8] sm:$0xff] }
  0x4e   :  { %2136 = vmatpush3.msra.mxu1 %v943_v2  ;;  %2165 = vmatpush3.msra.mxu0 %v978_v3  ;;  %v1013_v52 = vld [vmem:[%s3995_s1 + $0x250] sm:$0xff]  ;;  %v1064_v55 = vld [vmem:[%s3995_s1 + $0x3e8] sm:$0xff]  ;;  %v1027_v58 = vld [vmem:[%s3995_s1 + $0x2c0] sm:$0xff] }
  0x4f   :  { %2137 = vmatprep.subr.mxu1 %v958_v5  ;;  %2166 = vmatprep.subr.mxu0 %v993_v6  ;;  %v1049_v53 = vld [vmem:[%s3995_s1 + $0x370] sm:$0xff]  ;;  %v1012_v56 = vld [vmem:[%s3995_s1 + $0x248] sm:$0xff]  ;;  %v1063_v59 = vld [vmem:[%s3995_s1 + $0x3e0] sm:$0xff] }
  0x50   :  { %2138 = vmatpush3.msra.mxu1 %v942_v7  ;;  %2167 = vmatpush3.msra.mxu0 %v977_v8  ;;  %v1048_v57 = vld [vmem:[%s3995_s1 + $0x368] sm:$0xff]  ;;  %v1011_v60 = vld [vmem:[%s3995_s1 + $0x240] sm:$0xff]  ;;  %v1026_v62 = vld [vmem:[%s3995_s1 + $0x2b8] sm:$0xff] }
  0x51   :  { %2139 = vmatprep.subr.mxu1 %v957_v10  ;;  %2168 = vmatprep.subr.mxu0 %v992_v11  ;;  %v1047_v61 = vld [vmem:[%s3995_s1 + $0x360] sm:$0xff]  ;;  %v1062_v63 = vld [vmem:[%s3995_s1 + $0x3d8] sm:$0xff]  ;;  %v1025_v2 = vld [vmem:[%s3995_s1 + $0x2b0] sm:$0xff] }
  0x52   :  { %2140 = vmatpush3.msra.mxu1 %v941_v12  ;;  %2169 = vmatpush3.msra.mxu0 %v976_v13  ;;  %v1010_v0 = vld [vmem:[%s3995_s1 + $0x238] sm:$0xff]  ;;  %v1061_v3 = vld [vmem:[%s3995_s1 + $0x3d0] sm:$0xff]  ;;  %v1024_v7 = vld [vmem:[%s3995_s1 + $0x2a8] sm:$0xff] }
  0x53   :  { %2141 = vmatprep.subr.mxu1 %v956_v14  ;;  %2170 = vmatprep.subr.mxu0 %v991_v15  ;;  %v1046_v1 = vld [vmem:[%s3995_s1 + $0x358] sm:$0xff]  ;;  %v1009_v5 = vld [vmem:[%s3995_s1 + $0x230] sm:$0xff]  ;;  %v1060_v8 = vld [vmem:[%s3995_s1 + $0x3c8] sm:$0xff] }
  0x54   :  { %2142 = vmatpush3.msra.mxu1 %v940_v16  ;;  %2171 = vmatpush3.msra.mxu0 %v975_v17  ;;  %v1045_v6 = vld [vmem:[%s3995_s1 + $0x350] sm:$0xff]  ;;  %v1008_v10 = vld [vmem:[%s3995_s1 + $0x228] sm:$0xff]  ;;  %v1023_v12 = vld [vmem:[%s3995_s1 + $0x2a0] sm:$0xff] }
  0x55   :  { %2143 = vmatprep.subr.mxu1 %v955_v18  ;;  %2172 = vmatprep.subr.mxu0 %v990_v19  ;;  %v1044_v11 = vld [vmem:[%s3995_s1 + $0x348] sm:$0xff]  ;;  %v1059_v13 = vld [vmem:[%s3995_s1 + $0x3c0] sm:$0xff]  ;;  %v1022_v17 = vld [vmem:[%s3995_s1 + $0x298] sm:$0xff] }
  0x56   :  { %2144 = vmatpush3.msra.mxu1 %v939_v20  ;;  %2173 = vmatpush3.msra.mxu0 %v974_v21  ;;  %v1007_v15 = vld [vmem:[%s3995_s1 + $0x220] sm:$0xff]  ;;  %v1058_v18 = vld [vmem:[%s3995_s1 + $0x3b8] sm:$0xff]  ;;  %v1021_v21 = vld [vmem:[%s3995_s1 + $0x290] sm:$0xff] }
  0x57   :  { %2183 = vmatprep.subr.mxu1 %v1034_v22  ;;  %2174 = vmatprep.subr.mxu0 %v989_v23  ;;  %v1043_v16 = vld [vmem:[%s3995_s1 + $0x340] sm:$0xff]  ;;  %v1006_v19 = vld [vmem:[%s3995_s1 + $0x218] sm:$0xff]  ;;  %v1057_v22 = vld [vmem:[%s3995_s1 + $0x3b0] sm:$0xff] }
  0x58   :  { %2175 = vmatpush3.msra.mxu0 %v973_v24  ;;  %v1042_v20 = vld [vmem:[%s3995_s1 + $0x338] sm:$0xff]  ;;  %v900_v24 = vld [vmem:[%s3997_s3 + $0x28] sm:$0xff] }
  0x59   :  { %2176 = vmatprep.subr.mxu0 %v988_v25  ;;  %v1005_v25 = vld [vmem:[%s3995_s1 + $0x210] sm:$0xff] }
  0x5a   :  { %2177 = vmatpush3.msra.mxu0 %v972_v26  ;;  %v1041_v26 = vld [vmem:[%s3995_s1 + $0x330] sm:$0xff] }
  0x5b   :  { %2178 = vmatprep.subr.mxu0 %v987_v27  ;;  %v1020_v27 = vld [vmem:[%s3995_s1 + $0x288] sm:$0xff] }
  0x5c   :  { %2179 = vmatpush3.msra.mxu0 %v971_v28  ;;  %v1056_v28 = vld [vmem:[%s3995_s1 + $0x3a8] sm:$0xff] }
  0x5d   :  { %2218 = vmatprep.subr.mxu0 %v1066_v29 }
  0xca   :  { %v180_v30 = vpop.f32.mrf.mxu0 }
  0xcb   :  { %v917_v34 = vmul.f32 %v895_v4, %v180_v30  ;;  %v1004_v30 = vld [vmem:[%s3995_s1 + $0x208] sm:$0xff]  ;;  %v899_v4 = vld [vmem:[%s3997_s3 + $0x20] sm:$0xff] }
  0xcc   :  { %v182_v32 = vpop.f32.mrf.mxu0 }
  0xcd   :  { %v918_v33 = vmul.f32 %v896_v31, %v182_v32  ;;  %v1040_v31 = vld [vmem:[%s3995_s1 + $0x328] sm:$0xff]  ;;  %v1019_v32 = vld [vmem:[%s3995_s1 + $0x280] sm:$0xff] }
  0xcf   :  { %1355 = vmatprep.mubr.f32.mxu1 %v918_v33  ;;  %v1055_v33 = vld [vmem:[%s3995_s1 + $0x3a0] sm:$0xff] }
  0xd0   :  { %1356 = vmatmul.mubr.f32.vlgmr.msra.gmra.mxu1 %v917_v34  ;;  %v1003_v34 = vld [vmem:[%s3995_s1 + $0x200] sm:$0xff] }
  0xd1   :  { %2184 = vmatpush3.msra.mxu1 %v1018_v35  ;;  %v1039_v35 = vld [vmem:[%s3995_s1 + $0x320] sm:$0xff] }
  0xd2   :  { %2185 = vmatprep.subr.mxu1 %v1033_v36  ;;  %v251_v40 = vpop.f32.mrf.mxu0  ;;  %v393_v36 = vpop.f32.mrf.mxu1 }
  0xd3   :  { %2186 = vmatpush3.msra.mxu1 %v1017_v37  ;;  %v919_v43 = vmul.f32 %v897_v38, %v251_v40  ;;  %v1054_v38 = vld [vmem:[%s3995_s1 + $0x398] sm:$0xff] }
  0xd4   :  { %2187 = vmatprep.subr.mxu1 %v1032_v39  ;;  %v253_v44 = vpop.f32.mrf.mxu0  ;;  %v1098_v39 = vld [vmem:[%s3995_s1 + $0x4f8] sm:$0xff] }
  0xd5   :  { %v920_v46 = vmul.f32 %v898_v9, %v253_v44  ;;  %2188 = vmatpush3.msra.mxu1 %v1016_v41  ;;  %v1038_v40 = vld [vmem:[%s3995_s1 + $0x318] sm:$0xff]  ;;  %v1053_v41 = vld [vmem:[%s3995_s1 + $0x390] sm:$0xff] }
  0xd6   :  { %2189 = vmatprep.subr.mxu1 %v1031_v42  ;;  %v1082_v9 = vld [vmem:[%s3995_s1 + $0x478] sm:$0xff]  ;;  %v1097_v42 = vld [vmem:[%s3995_s1 + $0x4f0] sm:$0xff] }
  0xd7   :  { %2190 = vmatpush3.msra.mxu1 %v1015_v45  ;;  %1425 = vmatprep.mubr.f32.mxu0 %v920_v46  ;;  %v1081_v44 = vld [vmem:[%s3995_s1 + $0x470] sm:$0xff]  ;;  %v395_v45 = vpop.f32.mrf.mxu1  ;;  %v902_v46 = vld [vmem:[%s3997_s3 + $0x38] sm:$0xff] }
  0xd8   :  { %2191 = vmatprep.subr.mxu1 %v1030_v47  ;;  %1426 = vmatmul.mubr.f32.vlgmr.msra.gmra.mxu0 %v919_v43  ;;  %v1037_v43 = vld [vmem:[%s3995_s1 + $0x310] sm:$0xff] }
  0xd9   :  { %2192 = vmatpush3.msra.mxu1 %v1014_v48  ;;  %2219 = vmatpush3.msra.mxu0 %v1050_v49  ;;  %v901_v47 = vld [vmem:[%s3997_s3 + $0x30] sm:$0xff]  ;;  %v1052_v48 = vld [vmem:[%s3995_s1 + $0x388] sm:$0xff] }
  0xda   :  { %2193 = vmatprep.subr.mxu1 %v1029_v50  ;;  %2220 = vmatprep.subr.mxu0 %v1065_v51  ;;  %v322_v14 = vpop.f32.mrf.mxu0  ;;  %v1096_v49 = vld [vmem:[%s3995_s1 + $0x4e8] sm:$0xff] }
  0xdb   :  { %2194 = vmatpush3.msra.mxu1 %v1013_v52  ;;  %2221 = vmatpush3.msra.mxu0 %v1049_v53  ;;  %v921_v37 = vmul.f32 %v899_v4, %v322_v14  ;;  %v1036_v50 = vld [vmem:[%s3995_s1 + $0x308] sm:$0xff]  ;;  %v924_v52 = vmul.f32 %v902_v46, %v395_v45  ;;  %v1051_v53 = vld [vmem:[%s3995_s1 + $0x380] sm:$0xff]  ;;  %v1074_v14 = vld [vmem:[%s3995_s1 + $0x438] sm:$0xff] }
  0xdc   :  { %2195 = vmatprep.subr.mxu1 %v1028_v54  ;;  %2222 = vmatprep.subr.mxu0 %v1064_v55  ;;  %v324_v23 = vpop.f32.mrf.mxu0  ;;  %v1080_v51 = vld [vmem:[%s3995_s1 + $0x468] sm:$0xff]  ;;  %v1095_v54 = vld [vmem:[%s3995_s1 + $0x4e0] sm:$0xff]  ;;  %v923_v55 = vmul.f32 %v901_v47, %v393_v36  ;;  %v1106_v4 = vld [vmem:[%s3995_s1 + $0x538] sm:$0xff] }
  0xdd   :  { %2196 = vmatpush3.msra.mxu1 %v1012_v56  ;;  %2223 = vmatpush3.msra.mxu0 %v1048_v57  ;;  %v922_v29 = vmul.f32 %v900_v24, %v324_v23  ;;  %v1035_v56 = vld [vmem:[%s3995_s1 + $0x300] sm:$0xff]  ;;  %v1108_v23 = vld [vmem:[%s3995_s1 + $0x548] sm:$0xff]  ;;  %v1069_v36 = vld [vmem:[%s3995_s1 + $0x410] sm:$0xff] }
  0xde   :  { %2197 = vmatprep.subr.mxu1 %v1027_v58  ;;  %2224 = vmatprep.subr.mxu0 %v1063_v59  ;;  %v1079_v57 = vld [vmem:[%s3995_s1 + $0x460] sm:$0xff]  ;;  %v1094_v58 = vld [vmem:[%s3995_s1 + $0x4d8] sm:$0xff]  ;;  %v535_v47 = vpop.f32.mrf.mxu1 }
  0xdf   :  { %2198 = vmatpush3.msra.mxu1 %v1011_v60  ;;  %2225 = vmatpush3.msra.mxu0 %v1047_v61  ;;  %v1130_v59 = vld [vmem:[%s3995_s1 + $0x5f8] sm:$0xff]  ;;  %v1087_v24 = vld [vmem:[%s3995_s1 + $0x4a0] sm:$0xff] }
  0xe0   :  { %2199 = vmatprep.subr.mxu1 %v1026_v62  ;;  %2226 = vmatprep.subr.mxu0 %v1062_v63  ;;  %v1078_v60 = vld [vmem:[%s3995_s1 + $0x458] sm:$0xff]  ;;  %v1093_v62 = vld [vmem:[%s3995_s1 + $0x4d0] sm:$0xff]  ;;  %v1067_v45 = vld [vmem:[%s3995_s1 + $0x400] sm:$0xff] }
  0xe1   :  { %2200 = vmatpush3.msra.mxu1 %v1010_v0  ;;  %2227 = vmatpush3.msra.mxu0 %v1046_v1  ;;  %v1114_v61 = vld [vmem:[%s3995_s1 + $0x578] sm:$0xff]  ;;  %v1129_v63 = vld [vmem:[%s3995_s1 + $0x5f0] sm:$0xff]  ;;  %v1103_v46 = vld [vmem:[%s3995_s1 + $0x520] sm:$0xff] }
  0xe2   :  { %2201 = vmatprep.subr.mxu1 %v1025_v2  ;;  %2228 = vmatprep.subr.mxu0 %v1061_v3  ;;  %v1077_v0 = vld [vmem:[%s3995_s1 + $0x450] sm:$0xff]  ;;  %v1092_v2 = vld [vmem:[%s3995_s1 + $0x4c8] sm:$0xff] }
  0xe3   :  { %2202 = vmatpush3.msra.mxu1 %v1009_v5  ;;  %2229 = vmatpush3.msra.mxu0 %v1045_v6  ;;  %v1113_v1 = vld [vmem:[%s3995_s1 + $0x570] sm:$0xff]  ;;  %v1128_v3 = vld [vmem:[%s3995_s1 + $0x5e8] sm:$0xff] }
  0xe4   :  { %2203 = vmatprep.subr.mxu1 %v1024_v7  ;;  %2230 = vmatprep.subr.mxu0 %v1060_v8  ;;  %v1076_v5 = vld [vmem:[%s3995_s1 + $0x448] sm:$0xff]  ;;  %v1091_v7 = vld [vmem:[%s3995_s1 + $0x4c0] sm:$0xff] }
  0xe5   :  { %2204 = vmatpush3.msra.mxu1 %v1008_v10  ;;  %2231 = vmatpush3.msra.mxu0 %v1044_v11  ;;  %v1112_v6 = vld [vmem:[%s3995_s1 + $0x568] sm:$0xff]  ;;  %v1127_v8 = vld [vmem:[%s3995_s1 + $0x5e0] sm:$0xff] }
  0xe6   :  { %2205 = vmatprep.subr.mxu1 %v1023_v12  ;;  %2232 = vmatprep.subr.mxu0 %v1059_v13  ;;  %v1075_v10 = vld [vmem:[%s3995_s1 + $0x440] sm:$0xff]  ;;  %v1090_v12 = vld [vmem:[%s3995_s1 + $0x4b8] sm:$0xff] }
  0xe7   :  { %2206 = vmatpush3.msra.mxu1 %v1007_v15  ;;  %2233 = vmatpush3.msra.mxu0 %v1043_v16  ;;  %v1111_v11 = vld [vmem:[%s3995_s1 + $0x560] sm:$0xff]  ;;  %v1126_v13 = vld [vmem:[%s3995_s1 + $0x5d8] sm:$0xff]  ;;  %v1089_v16 = vld [vmem:[%s3995_s1 + $0x4b0] sm:$0xff] }
  0xe8   :  { %2207 = vmatprep.subr.mxu1 %v1022_v17  ;;  %2234 = vmatprep.subr.mxu0 %v1058_v18  ;;  %v1110_v15 = vld [vmem:[%s3995_s1 + $0x558] sm:$0xff]  ;;  %v1125_v17 = vld [vmem:[%s3995_s1 + $0x5d0] sm:$0xff] }
  0xe9   :  { %2208 = vmatpush3.msra.mxu1 %v1006_v19  ;;  %2235 = vmatpush3.msra.mxu0 %v1042_v20  ;;  %v1073_v18 = vld [vmem:[%s3995_s1 + $0x430] sm:$0xff]  ;;  %v1088_v20 = vld [vmem:[%s3995_s1 + $0x4a8] sm:$0xff] }
  0xea   :  { %2209 = vmatprep.subr.mxu1 %v1021_v21  ;;  %2236 = vmatprep.subr.mxu0 %v1057_v22  ;;  %v1109_v19 = vld [vmem:[%s3995_s1 + $0x550] sm:$0xff]  ;;  %v1124_v21 = vld [vmem:[%s3995_s1 + $0x5c8] sm:$0xff] }
  0xeb   :  { %2210 = vmatpush3.msra.mxu1 %v1005_v25  ;;  %2237 = vmatpush3.msra.mxu0 %v1041_v26  ;;  %v1072_v22 = vld [vmem:[%s3995_s1 + $0x428] sm:$0xff]  ;;  %v1123_v25 = vld [vmem:[%s3995_s1 + $0x5c0] sm:$0xff]  ;;  %v464_v26 = vpop.f32.mrf.mxu0 }
  0xec   :  { %2211 = vmatprep.subr.mxu1 %v1020_v27  ;;  %2238 = vmatprep.subr.mxu0 %v1056_v28  ;;  %v1071_v27 = vld [vmem:[%s3995_s1 + $0x420] sm:$0xff] }
  0xed   :  { %2212 = vmatpush3.msra.mxu1 %v1004_v30  ;;  %2239 = vmatpush3.msra.mxu0 %v1040_v31  ;;  %v1107_v28 = vld [vmem:[%s3995_s1 + $0x540] sm:$0xff]  ;;  %v1122_v30 = vld [vmem:[%s3995_s1 + $0x5b8] sm:$0xff] }
  0xee   :  { %2213 = vmatprep.subr.mxu1 %v1019_v32  ;;  %1495 = vmatprep.mubr.f32.mxu1 %v922_v29  ;;  %v1086_v29 = vld [vmem:[%s3995_s1 + $0x498] sm:$0xff]  ;;  %v1085_v32 = vld [vmem:[%s3995_s1 + $0x490] sm:$0xff] }
  0xef   :  { %2240 = vmatprep.subr.mxu0 %v1055_v33  ;;  %2214 = vmatpush3.msra.mxu1 %v1003_v34  ;;  %v1070_v31 = vld [vmem:[%s3995_s1 + $0x418] sm:$0xff]  ;;  %v1121_v33 = vld [vmem:[%s3995_s1 + $0x5b0] sm:$0xff]  ;;  %v466_v34 = vpop.f32.mrf.mxu0 }
  0xf0   :  { %2241 = vmatpush3.msra.mxu0 %v1039_v35  ;;  %1496 = vmatmul.mubr.f32.vlgmr.msra.gmra.mxu1 %v921_v37  ;;  %v904_v35 = vld [vmem:[%s3997_s3 + $0x48] sm:$0xff]  ;;  %v1105_v37 = vld [vmem:[%s3995_s1 + $0x530] sm:$0xff] }
  0xf1   :  { %2242 = vmatprep.subr.mxu0 %v1054_v38  ;;  %2253 = vmatprep.subr.mxu1 %v1098_v39  ;;  %v1084_v38 = vld [vmem:[%s3995_s1 + $0x488] sm:$0xff] }
  0xf2   :  { %2243 = vmatpush3.msra.mxu0 %v1038_v40  ;;  %2254 = vmatpush3.msra.mxu1 %v1082_v9  ;;  %v1120_v39 = vld [vmem:[%s3995_s1 + $0x5a8] sm:$0xff]  ;;  %v926_v40 = vmul.f32 %v904_v35, %v466_v34  ;;  %v1151_v35 = vld [vmem:[%s3995_s1 + $0x6a0] sm:$0xff] }
  0xf3   :  { %2244 = vmatprep.subr.mxu0 %v1053_v41  ;;  %2255 = vmatprep.subr.mxu1 %v1097_v42  ;;  %v1068_v9 = vld [vmem:[%s3995_s1 + $0x408] sm:$0xff]  ;;  %v903_v42 = vld [vmem:[%s3997_s3 + $0x40] sm:$0xff] }
  0xf4   :  { %2245 = vmatpush3.msra.mxu0 %v1037_v43  ;;  %2256 = vmatpush3.msra.mxu1 %v1081_v44  ;;  %v1104_v41 = vld [vmem:[%s3995_s1 + $0x528] sm:$0xff]  ;;  %v1083_v43 = vld [vmem:[%s3995_s1 + $0x480] sm:$0xff] }
  0xf5   :  { %2246 = vmatprep.subr.mxu0 %v1052_v48  ;;  %2257 = vmatprep.subr.mxu1 %v1096_v49  ;;  %v1119_v44 = vld [vmem:[%s3995_s1 + $0x5a0] sm:$0xff]  ;;  %v925_v48 = vmul.f32 %v903_v42, %v464_v26  ;;  %v1118_v49 = vld [vmem:[%s3995_s1 + $0x598] sm:$0xff]  ;;  %v1172_v34 = vld [vmem:[%s3995_s1 + $0x748] sm:$0xff] }
  0xf6   :  { %2247 = vmatpush3.msra.mxu0 %v1036_v50  ;;  %2258 = vmatpush3.msra.mxu1 %v1080_v51  ;;  %v1162_v50 = vld [vmem:[%s3995_s1 + $0x6f8] sm:$0xff] }
  0xf7   :  { %2248 = vmatprep.subr.mxu0 %v1051_v53  ;;  %2259 = vmatprep.subr.mxu1 %v1095_v54  ;;  %v1102_v51 = vld [vmem:[%s3995_s1 + $0x518] sm:$0xff]  ;;  %v1117_v53 = vld [vmem:[%s3995_s1 + $0x590] sm:$0xff] }
  0xf8   :  { %2249 = vmatpush3.msra.mxu0 %v1035_v56  ;;  %1565 = vmatprep.mubr.f32.mxu0 %v924_v52  ;;  %v1146_v52 = vld [vmem:[%s3995_s1 + $0x678] sm:$0xff]  ;;  %v1161_v54 = vld [vmem:[%s3995_s1 + $0x6f0] sm:$0xff] }
  0xf9   :  { %2260 = vmatpush3.msra.mxu1 %v1079_v57  ;;  %1566 = vmatmul.mubr.f32.vlgmr.msra.gmra.mxu0 %v923_v55  ;;  %v1101_v55 = vld [vmem:[%s3995_s1 + $0x510] sm:$0xff]  ;;  %v537_v57 = vpop.f32.mrf.mxu1  ;;  %v1138_v26 = vld [vmem:[%s3995_s1 + $0x638] sm:$0xff] }
  0xfa   :  { %2261 = vmatprep.subr.mxu1 %v1094_v58  ;;  %2288 = vmatprep.subr.mxu0 %v1130_v59  ;;  %v1145_v56 = vld [vmem:[%s3995_s1 + $0x670] sm:$0xff]  ;;  %v906_v58 = vld [vmem:[%s3997_s3 + $0x58] sm:$0xff] }
  0xfb   :  { %2262 = vmatpush3.msra.mxu1 %v1078_v60  ;;  %2289 = vmatpush3.msra.mxu0 %v1114_v61  ;;  %v905_v59 = vld [vmem:[%s3997_s3 + $0x50] sm:$0xff]  ;;  %v1116_v60 = vld [vmem:[%s3995_s1 + $0x588] sm:$0xff]  ;;  %v1170_v42 = vld [vmem:[%s3995_s1 + $0x738] sm:$0xff] }
  0xfc   :  { %2263 = vmatprep.subr.mxu1 %v1093_v62  ;;  %2290 = vmatprep.subr.mxu0 %v1129_v63  ;;  %v1160_v61 = vld [vmem:[%s3995_s1 + $0x6e8] sm:$0xff] }
  0xfd   :  { %2264 = vmatpush3.msra.mxu1 %v1077_v0  ;;  %2291 = vmatpush3.msra.mxu0 %v1113_v1  ;;  %v1100_v62 = vld [vmem:[%s3995_s1 + $0x508] sm:$0xff]  ;;  %v928_v0 = vmul.f32 %v906_v58, %v537_v57  ;;  %v1115_v1 = vld [vmem:[%s3995_s1 + $0x580] sm:$0xff] }
  0xfe   :  { %2265 = vmatprep.subr.mxu1 %v1092_v2  ;;  %2292 = vmatprep.subr.mxu0 %v1128_v3  ;;  %v1144_v63 = vld [vmem:[%s3995_s1 + $0x668] sm:$0xff]  ;;  %v1159_v2 = vld [vmem:[%s3995_s1 + $0x6e0] sm:$0xff]  ;;  %v927_v3 = vmul.f32 %v905_v59, %v535_v47  ;;  %v1133_v47 = vld [vmem:[%s3995_s1 + $0x610] sm:$0xff]  ;;  %v677_v59 = vpop.f32.mrf.mxu1 }
  0xff   :  { %2266 = vmatpush3.msra.mxu1 %v1076_v5  ;;  %2293 = vmatpush3.msra.mxu0 %v1112_v6  ;;  %v1099_v5 = vld [vmem:[%s3995_s1 + $0x500] sm:$0xff] }
 0x100   :  { %2267 = vmatprep.subr.mxu1 %v1091_v7  ;;  %2294 = vmatprep.subr.mxu0 %v1127_v8  ;;  %v1143_v6 = vld [vmem:[%s3995_s1 + $0x660] sm:$0xff]  ;;  %v1158_v7 = vld [vmem:[%s3995_s1 + $0x6d8] sm:$0xff] }
 0x101   :  { %2268 = vmatpush3.msra.mxu1 %v1075_v10  ;;  %2295 = vmatpush3.msra.mxu0 %v1111_v11  ;;  %v1194_v8 = vld [vmem:[%s3995_s1 + $0x7f8] sm:$0xff]  ;;  %v1131_v57 = vld [vmem:[%s3995_s1 + $0x600] sm:$0xff] }
 0x102   :  { %2269 = vmatprep.subr.mxu1 %v1090_v12  ;;  %2296 = vmatprep.subr.mxu0 %v1126_v13  ;;  %v1142_v10 = vld [vmem:[%s3995_s1 + $0x658] sm:$0xff]  ;;  %v1157_v12 = vld [vmem:[%s3995_s1 + $0x6d0] sm:$0xff]  ;;  %v1167_v58 = vld [vmem:[%s3995_s1 + $0x720] sm:$0xff] }
 0x103   :  { %2270 = vmatpush3.msra.mxu1 %v1074_v14  ;;  %2297 = vmatpush3.msra.mxu0 %v1110_v15  ;;  %v1178_v11 = vld [vmem:[%s3995_s1 + $0x778] sm:$0xff]  ;;  %v1193_v13 = vld [vmem:[%s3995_s1 + $0x7f0] sm:$0xff] }
 0x104   :  { %2271 = vmatprep.subr.mxu1 %v1089_v16  ;;  %2298 = vmatprep.subr.mxu0 %v1125_v17  ;;  %v1141_v14 = vld [vmem:[%s3995_s1 + $0x650] sm:$0xff]  ;;  %v1156_v16 = vld [vmem:[%s3995_s1 + $0x6c8] sm:$0xff] }
 0x105   :  { %2272 = vmatpush3.msra.mxu1 %v1073_v18  ;;  %2299 = vmatpush3.msra.mxu0 %v1109_v19  ;;  %v1177_v15 = vld [vmem:[%s3995_s1 + $0x770] sm:$0xff]  ;;  %v1192_v17 = vld [vmem:[%s3995_s1 + $0x7e8] sm:$0xff] }
 0x106   :  { %2273 = vmatprep.subr.mxu1 %v1088_v20  ;;  %2300 = vmatprep.subr.mxu0 %v1124_v21  ;;  %v1140_v18 = vld [vmem:[%s3995_s1 + $0x648] sm:$0xff]  ;;  %v1155_v20 = vld [vmem:[%s3995_s1 + $0x6c0] sm:$0xff] }
 0x107   :  { %2274 = vmatpush3.msra.mxu1 %v1072_v22  ;;  %2301 = vmatpush3.msra.mxu0 %v1108_v23  ;;  %v1176_v19 = vld [vmem:[%s3995_s1 + $0x768] sm:$0xff]  ;;  %v1191_v21 = vld [vmem:[%s3995_s1 + $0x7e0] sm:$0xff] }
 0x108   :  { %2275 = vmatprep.subr.mxu1 %v1087_v24  ;;  %2302 = vmatprep.subr.mxu0 %v1123_v25  ;;  %v1139_v22 = vld [vmem:[%s3995_s1 + $0x640] sm:$0xff]  ;;  %v1154_v24 = vld [vmem:[%s3995_s1 + $0x6b8] sm:$0xff] }
 0x109   :  { %2276 = vmatpush3.msra.mxu1 %v1071_v27  ;;  %2303 = vmatpush3.msra.mxu0 %v1107_v28  ;;  %v1175_v23 = vld [vmem:[%s3995_s1 + $0x760] sm:$0xff]  ;;  %v1190_v25 = vld [vmem:[%s3995_s1 + $0x7d8] sm:$0xff]  ;;  %v1153_v28 = vld [vmem:[%s3995_s1 + $0x6b0] sm:$0xff] }
 0x10a   :  { %2277 = vmatprep.subr.mxu1 %v1086_v29  ;;  %2304 = vmatprep.subr.mxu0 %v1122_v30  ;;  %v1174_v27 = vld [vmem:[%s3995_s1 + $0x758] sm:$0xff]  ;;  %v1189_v29 = vld [vmem:[%s3995_s1 + $0x7d0] sm:$0xff] }
 0x10b   :  { %2278 = vmatpush3.msra.mxu1 %v1070_v31  ;;  %2305 = vmatpush3.msra.mxu0 %v1106_v4  ;;  %v1137_v30 = vld [vmem:[%s3995_s1 + $0x630] sm:$0xff]  ;;  %v1152_v4 = vld [vmem:[%s3995_s1 + $0x6a8] sm:$0xff] }
 0x10c   :  { %2279 = vmatprep.subr.mxu1 %v1085_v32  ;;  %2306 = vmatprep.subr.mxu0 %v1121_v33  ;;  %v1173_v31 = vld [vmem:[%s3995_s1 + $0x750] sm:$0xff]  ;;  %v1188_v32 = vld [vmem:[%s3995_s1 + $0x7c8] sm:$0xff] }
 0x10d   :  { %2280 = vmatpush3.msra.mxu1 %v1069_v36  ;;  %2307 = vmatpush3.msra.mxu0 %v1105_v37  ;;  %v1136_v33 = vld [vmem:[%s3995_s1 + $0x628] sm:$0xff]  ;;  %v1187_v36 = vld [vmem:[%s3995_s1 + $0x7c0] sm:$0xff]  ;;  %v606_v37 = vpop.f32.mrf.mxu0 }
 0x10e   :  { %2281 = vmatprep.subr.mxu1 %v1084_v38  ;;  %2308 = vmatprep.subr.mxu0 %v1120_v39  ;;  %v1135_v38 = vld [vmem:[%s3995_s1 + $0x620] sm:$0xff] }
 0x10f   :  { %2282 = vmatpush3.msra.mxu1 %v1068_v9  ;;  %2309 = vmatpush3.msra.mxu0 %v1104_v41  ;;  %v1171_v39 = vld [vmem:[%s3995_s1 + $0x740] sm:$0xff]  ;;  %v1186_v9 = vld [vmem:[%s3995_s1 + $0x7b8] sm:$0xff] }
 0x110   :  { %2283 = vmatprep.subr.mxu1 %v1083_v43  ;;  %1635 = vmatprep.mubr.f32.mxu1 %v926_v40  ;;  %v1150_v40 = vld [vmem:[%s3995_s1 + $0x698] sm:$0xff]  ;;  %v1149_v43 = vld [vmem:[%s3995_s1 + $0x690] sm:$0xff] }
 0x111   :  { %2310 = vmatprep.subr.mxu0 %v1119_v44  ;;  %2284 = vmatpush3.msra.mxu1 %v1067_v45  ;;  %v1134_v41 = vld [vmem:[%s3995_s1 + $0x618] sm:$0xff]  ;;  %v1185_v44 = vld [vmem:[%s3995_s1 + $0x7b0] sm:$0xff]  ;;  %v608_v45 = vpop.f32.mrf.mxu0 }
 0x112   :  { %2311 = vmatpush3.msra.mxu0 %v1103_v46  ;;  %1636 = vmatmul.mubr.f32.vlgmr.msra.gmra.mxu1 %v925_v48  ;;  %v908_v46 = vld [vmem:[%s3997_s3 + $0x68] sm:$0xff]  ;;  %v1169_v48 = vld [vmem:[%s3995_s1 + $0x730] sm:$0xff] }
 0x113   :  { %2312 = vmatprep.subr.mxu0 %v1118_v49  ;;  %2323 = vmatprep.subr.mxu1 %v1162_v50  ;;  %v1148_v49 = vld [vmem:[%s3995_s1 + $0x688] sm:$0xff] }
 0x114   :  { %2313 = vmatpush3.msra.mxu0 %v1102_v51  ;;  %2324 = vmatpush3.msra.mxu1 %v1146_v52  ;;  %v1184_v50 = vld [vmem:[%s3995_s1 + $0x7a8] sm:$0xff]  ;;  %v930_v51 = vmul.f32 %v908_v46, %v608_v45  ;;  %v1215_v46 = vld [vmem:[%s3995_s1 + $0x8a0] sm:$0xff] }
 0x115   :  { %2314 = vmatprep.subr.mxu0 %v1117_v53  ;;  %2325 = vmatprep.subr.mxu1 %v1161_v54  ;;  %v1132_v52 = vld [vmem:[%s3995_s1 + $0x608] sm:$0xff]  ;;  %v907_v54 = vld [vmem:[%s3997_s3 + $0x60] sm:$0xff] }
 0x116   :  { %2315 = vmatpush3.msra.mxu0 %v1101_v55  ;;  %2326 = vmatpush3.msra.mxu1 %v1145_v56  ;;  %v1168_v53 = vld [vmem:[%s3995_s1 + $0x728] sm:$0xff]  ;;  %v1147_v55 = vld [vmem:[%s3995_s1 + $0x680] sm:$0xff] }
 0x117   :  { %2316 = vmatprep.subr.mxu0 %v1116_v60  ;;  %2327 = vmatprep.subr.mxu1 %v1160_v61  ;;  %v1183_v56 = vld [vmem:[%s3995_s1 + $0x7a0] sm:$0xff]  ;;  %v929_v60 = vmul.f32 %v907_v54, %v606_v37  ;;  %v1182_v61 = vld [vmem:[%s3995_s1 + $0x798] sm:$0xff]  ;;  %v1236_v45 = vld [vmem:[%s3995_s1 + $0x948] sm:$0xff] }
 0x118   :  { %2317 = vmatpush3.msra.mxu0 %v1100_v62  ;;  %2328 = vmatpush3.msra.mxu1 %v1144_v63  ;;  %v1226_v62 = vld [vmem:[%s3995_s1 + $0x8f8] sm:$0xff] }
 0x119   :  { %2318 = vmatprep.subr.mxu0 %v1115_v1  ;;  %2329 = vmatprep.subr.mxu1 %v1159_v2  ;;  %v1166_v63 = vld [vmem:[%s3995_s1 + $0x718] sm:$0xff]  ;;  %v1181_v1 = vld [vmem:[%s3995_s1 + $0x790] sm:$0xff] }
 0x11a   :  { %2319 = vmatpush3.msra.mxu0 %v1099_v5  ;;  %1705 = vmatprep.mubr.f32.mxu0 %v928_v0  ;;  %v1210_v0 = vld [vmem:[%s3995_s1 + $0x878] sm:$0xff]  ;;  %v1225_v2 = vld [vmem:[%s3995_s1 + $0x8f0] sm:$0xff] }
 0x11b   :  { %2330 = vmatpush3.msra.mxu1 %v1143_v6  ;;  %1706 = vmatmul.mubr.f32.vlgmr.msra.gmra.mxu0 %v927_v3  ;;  %v1165_v3 = vld [vmem:[%s3995_s1 + $0x710] sm:$0xff]  ;;  %v679_v6 = vpop.f32.mrf.mxu1  ;;  %v1202_v37 = vld [vmem:[%s3995_s1 + $0x838] sm:$0xff] }
 0x11c   :  { %2331 = vmatprep.subr.mxu1 %v1158_v7  ;;  %2358 = vmatprep.subr.mxu0 %v1194_v8  ;;  %v1209_v5 = vld [vmem:[%s3995_s1 + $0x870] sm:$0xff]  ;;  %v910_v7 = vld [vmem:[%s3997_s3 + $0x78] sm:$0xff] }
 0x11d   :  { %2332 = vmatpush3.msra.mxu1 %v1142_v10  ;;  %2359 = vmatpush3.msra.mxu0 %v1178_v11  ;;  %v909_v8 = vld [vmem:[%s3997_s3 + $0x70] sm:$0xff]  ;;  %v1180_v10 = vld [vmem:[%s3995_s1 + $0x788] sm:$0xff]  ;;  %v1234_v54 = vld [vmem:[%s3995_s1 + $0x938] sm:$0xff] }
 0x11e   :  { %2333 = vmatprep.subr.mxu1 %v1157_v12  ;;  %2360 = vmatprep.subr.mxu0 %v1193_v13  ;;  %v1224_v11 = vld [vmem:[%s3995_s1 + $0x8e8] sm:$0xff] }
 0x11f   :  { %2334 = vmatpush3.msra.mxu1 %v1141_v14  ;;  %2361 = vmatpush3.msra.mxu0 %v1177_v15  ;;  %v1164_v12 = vld [vmem:[%s3995_s1 + $0x708] sm:$0xff]  ;;  %v932_v14 = vmul.f32 %v910_v7, %v679_v6  ;;  %v1179_v15 = vld [vmem:[%s3995_s1 + $0x780] sm:$0xff] }
 0x120   :  { %2335 = vmatprep.subr.mxu1 %v1156_v16  ;;  %2362 = vmatprep.subr.mxu0 %v1192_v17  ;;  %v1208_v13 = vld [vmem:[%s3995_s1 + $0x868] sm:$0xff]  ;;  %v1223_v16 = vld [vmem:[%s3995_s1 + $0x8e0] sm:$0xff]  ;;  %v931_v17 = vmul.f32 %v909_v8, %v677_v59  ;;  %v1197_v59 = vld [vmem:[%s3995_s1 + $0x810] sm:$0xff]  ;;  %v819_v8 = vpop.f32.mrf.mxu1 }
 0x121   :  { %2336 = vmatpush3.msra.mxu1 %v1140_v18  ;;  %2363 = vmatpush3.msra.mxu0 %v1176_v19  ;;  %v1163_v18 = vld [vmem:[%s3995_s1 + $0x700] sm:$0xff] }
 0x122   :  { %2337 = vmatprep.subr.mxu1 %v1155_v20  ;;  %2364 = vmatprep.subr.mxu0 %v1191_v21  ;;  %v1207_v19 = vld [vmem:[%s3995_s1 + $0x860] sm:$0xff]  ;;  %v1222_v20 = vld [vmem:[%s3995_s1 + $0x8d8] sm:$0xff] }
 0x123   :  { %2338 = vmatpush3.msra.mxu1 %v1139_v22  ;;  %2365 = vmatpush3.msra.mxu0 %v1175_v23  ;;  %v1258_v21 = vld [vmem:[%s3995_s1 + $0x9f8] sm:$0xff]  ;;  %v1195_v6 = vld [vmem:[%s3995_s1 + $0x800] sm:$0xff] }
 0x124   :  { %2339 = vmatprep.subr.mxu1 %v1154_v24  ;;  %2366 = vmatprep.subr.mxu0 %v1190_v25  ;;  %v1206_v22 = vld [vmem:[%s3995_s1 + $0x858] sm:$0xff]  ;;  %v1221_v24 = vld [vmem:[%s3995_s1 + $0x8d0] sm:$0xff]  ;;  %v1231_v7 = vld [vmem:[%s3995_s1 + $0x920] sm:$0xff] }
 0x125   :  { %2340 = vmatpush3.msra.mxu1 %v1138_v26  ;;  %2367 = vmatpush3.msra.mxu0 %v1174_v27  ;;  %v1242_v23 = vld [vmem:[%s3995_s1 + $0x978] sm:$0xff]  ;;  %v1257_v25 = vld [vmem:[%s3995_s1 + $0x9f0] sm:$0xff] }
 0x126   :  { %2341 = vmatprep.subr.mxu1 %v1153_v28  ;;  %2368 = vmatprep.subr.mxu0 %v1189_v29  ;;  %v1205_v26 = vld [vmem:[%s3995_s1 + $0x850] sm:$0xff]  ;;  %v1220_v28 = vld [vmem:[%s3995_s1 + $0x8c8] sm:$0xff] }
 0x127   :  { %2342 = vmatpush3.msra.mxu1 %v1137_v30  ;;  %2369 = vmatpush3.msra.mxu0 %v1173_v31  ;;  %v1241_v27 = vld [vmem:[%s3995_s1 + $0x970] sm:$0xff]  ;;  %v1256_v29 = vld [vmem:[%s3995_s1 + $0x9e8] sm:$0xff] }
 0x128   :  { %2343 = vmatprep.subr.mxu1 %v1152_v4  ;;  %2370 = vmatprep.subr.mxu0 %v1188_v32  ;;  %v1204_v30 = vld [vmem:[%s3995_s1 + $0x848] sm:$0xff]  ;;  %v1219_v4 = vld [vmem:[%s3995_s1 + $0x8c0] sm:$0xff] }
 0x129   :  { %2344 = vmatpush3.msra.mxu1 %v1136_v33  ;;  %2371 = vmatpush3.msra.mxu0 %v1172_v34  ;;  %v1240_v31 = vld [vmem:[%s3995_s1 + $0x968] sm:$0xff]  ;;  %v1255_v32 = vld [vmem:[%s3995_s1 + $0x9e0] sm:$0xff] }
 0x12a   :  { %2345 = vmatprep.subr.mxu1 %v1151_v35  ;;  %2372 = vmatprep.subr.mxu0 %v1187_v36  ;;  %v1203_v33 = vld [vmem:[%s3995_s1 + $0x840] sm:$0xff]  ;;  %v1218_v35 = vld [vmem:[%s3995_s1 + $0x8b8] sm:$0xff] }
 0x12b   :  { %2346 = vmatpush3.msra.mxu1 %v1135_v38  ;;  %2373 = vmatpush3.msra.mxu0 %v1171_v39  ;;  %v1239_v34 = vld [vmem:[%s3995_s1 + $0x960] sm:$0xff]  ;;  %v1254_v36 = vld [vmem:[%s3995_s1 + $0x9d8] sm:$0xff]  ;;  %v1217_v39 = vld [vmem:[%s3995_s1 + $0x8b0] sm:$0xff] }
 0x12c   :  { %2347 = vmatprep.subr.mxu1 %v1150_v40  ;;  %2374 = vmatprep.subr.mxu0 %v1186_v9  ;;  %v1238_v38 = vld [vmem:[%s3995_s1 + $0x958] sm:$0xff]  ;;  %v1253_v40 = vld [vmem:[%s3995_s1 + $0x9d0] sm:$0xff] }
 0x12d   :  { %2348 = vmatpush3.msra.mxu1 %v1134_v41  ;;  %2375 = vmatpush3.msra.mxu0 %v1170_v42  ;;  %v1201_v9 = vld [vmem:[%s3995_s1 + $0x830] sm:$0xff]  ;;  %v1216_v42 = vld [vmem:[%s3995_s1 + $0x8a8] sm:$0xff] }
 0x12e   :  { %2349 = vmatprep.subr.mxu1 %v1149_v43  ;;  %2376 = vmatprep.subr.mxu0 %v1185_v44  ;;  %v1237_v41 = vld [vmem:[%s3995_s1 + $0x950] sm:$0xff]  ;;  %v1252_v43 = vld [vmem:[%s3995_s1 + $0x9c8] sm:$0xff] }
 0x12f   :  { %2350 = vmatpush3.msra.mxu1 %v1133_v47  ;;  %2377 = vmatpush3.msra.mxu0 %v1169_v48  ;;  %v1200_v44 = vld [vmem:[%s3995_s1 + $0x828] sm:$0xff]  ;;  %v1251_v47 = vld [vmem:[%s3995_s1 + $0x9c0] sm:$0xff]  ;;  %v748_v48 = vpop.f32.mrf.mxu0 }
 0x130   :  { %2351 = vmatprep.subr.mxu1 %v1148_v49  ;;  %2378 = vmatprep.subr.mxu0 %v1184_v50  ;;  %v1199_v49 = vld [vmem:[%s3995_s1 + $0x820] sm:$0xff] }
 0x131   :  { %2352 = vmatpush3.msra.mxu1 %v1132_v52  ;;  %2379 = vmatpush3.msra.mxu0 %v1168_v53  ;;  %v1235_v50 = vld [vmem:[%s3995_s1 + $0x940] sm:$0xff]  ;;  %v1250_v52 = vld [vmem:[%s3995_s1 + $0x9b8] sm:$0xff] }
 0x132   :  { %2353 = vmatprep.subr.mxu1 %v1147_v55  ;;  %1775 = vmatprep.mubr.f32.mxu1 %v930_v51  ;;  %v1214_v51 = vld [vmem:[%s3995_s1 + $0x898] sm:$0xff]  ;;  %v1213_v55 = vld [vmem:[%s3995_s1 + $0x890] sm:$0xff] }
 0x133   :  { %2380 = vmatprep.subr.mxu0 %v1183_v56  ;;  %2354 = vmatpush3.msra.mxu1 %v1131_v57  ;;  %v1198_v53 = vld [vmem:[%s3995_s1 + $0x818] sm:$0xff]  ;;  %v1249_v56 = vld [vmem:[%s3995_s1 + $0x9b0] sm:$0xff]  ;;  %v750_v57 = vpop.f32.mrf.mxu0 }
 0x134   :  { %2381 = vmatpush3.msra.mxu0 %v1167_v58  ;;  %1776 = vmatmul.mubr.f32.vlgmr.msra.gmra.mxu1 %v929_v60  ;;  %v912_v58 = vld [vmem:[%s3997_s3 + $0x88] sm:$0xff]  ;;  %v1233_v60 = vld [vmem:[%s3995_s1 + $0x930] sm:$0xff] }
 0x135   :  { %2382 = vmatprep.subr.mxu0 %v1182_v61  ;;  %2393 = vmatprep.subr.mxu1 %v1226_v62  ;;  %v1212_v61 = vld [vmem:[%s3995_s1 + $0x888] sm:$0xff] }
 0x136   :  { %2383 = vmatpush3.msra.mxu0 %v1166_v63  ;;  %2394 = vmatpush3.msra.mxu1 %v1210_v0  ;;  %v1248_v62 = vld [vmem:[%s3995_s1 + $0x9a8] sm:$0xff]  ;;  %v934_v63 = vmul.f32 %v912_v58, %v750_v57  ;;  %v915_v58 = vld [vmem:[%s3997_s3 + $0xa0] sm:$0xff] }
 0x137   :  { %2384 = vmatprep.subr.mxu0 %v1181_v1  ;;  %2395 = vmatprep.subr.mxu1 %v1225_v2  ;;  %v1196_v0 = vld [vmem:[%s3995_s1 + $0x808] sm:$0xff]  ;;  %v911_v2 = vld [vmem:[%s3997_s3 + $0x80] sm:$0xff] }
 0x138   :  { %2385 = vmatpush3.msra.mxu0 %v1165_v3  ;;  %2396 = vmatpush3.msra.mxu1 %v1209_v5  ;;  %v1232_v1 = vld [vmem:[%s3995_s1 + $0x928] sm:$0xff]  ;;  %v1211_v3 = vld [vmem:[%s3995_s1 + $0x880] sm:$0xff] }
 0x139   :  { %2386 = vmatprep.subr.mxu0 %v1180_v10  ;;  %2397 = vmatprep.subr.mxu1 %v1224_v11  ;;  %v1247_v5 = vld [vmem:[%s3995_s1 + $0x9a0] sm:$0xff]  ;;  %v933_v10 = vmul.f32 %v911_v2, %v748_v48  ;;  %v1246_v11 = vld [vmem:[%s3995_s1 + $0x998] sm:$0xff]  ;;  %v1280_v48 = vld [vmem:[%s3995_s1 + $0xaa8] sm:$0xff] }
 0x13a   :  { %2387 = vmatpush3.msra.mxu0 %v1164_v12  ;;  %2398 = vmatpush3.msra.mxu1 %v1208_v13  ;;  %v1290_v12 = vld [vmem:[%s3995_s1 + $0xaf8] sm:$0xff]  ;;  %v1260_v57 = vld [vmem:[%s3995_s1 + $0xa08] sm:$0xff] }
 0x13b   :  { %2388 = vmatprep.subr.mxu0 %v1179_v15  ;;  %2399 = vmatprep.subr.mxu1 %v1223_v16  ;;  %v1230_v13 = vld [vmem:[%s3995_s1 + $0x918] sm:$0xff]  ;;  %v3865_v15 = vpop.f32.mrf.mxu0  ;;  %v1245_v16 = vld [vmem:[%s3995_s1 + $0x990] sm:$0xff] }
 0x13c   :  { %2389 = vmatpush3.msra.mxu0 %v1163_v18  ;;  %1845 = vmatprep.mubr.f32.mxu0 %v932_v14  ;;  %v1274_v14 = vld [vmem:[%s3995_s1 + $0xa78] sm:$0xff]  ;;  %v1229_v18 = vld [vmem:[%s3995_s1 + $0x910] sm:$0xff] }
 0x13d   :  { %2400 = vmatpush3.msra.mxu1 %v1207_v19  ;;  %1846 = vmatmul.mubr.f32.vlgmr.msra.gmra.mxu0 %v931_v17  ;;  %v1289_v17 = vld [vmem:[%s3995_s1 + $0xaf0] sm:$0xff] }
 0x13e   :  { %2401 = vmatprep.subr.mxu1 %v1222_v20  ;;  %2428 = vmatprep.subr.mxu0 %v1258_v21  ;;  %v1273_v19 = vld [vmem:[%s3995_s1 + $0xa70] sm:$0xff]  ;;  %v821_v20 = vpop.f32.mrf.mxu1  ;;  %v914_v21 = vld [vmem:[%s3997_s3 + $0x98] sm:$0xff] }
 0x13f   :  { %2402 = vmatpush3.msra.mxu1 %v1206_v22  ;;  %2429 = vmatpush3.msra.mxu0 %v1242_v23  ;;  %v913_v22 = vld [vmem:[%s3997_s3 + $0x90] sm:$0xff]  ;;  %v1244_v23 = vld [vmem:[%s3995_s1 + $0x988] sm:$0xff] }
 0x140   :  { %2403 = vmatprep.subr.mxu1 %v1221_v24  ;;  %2430 = vmatprep.subr.mxu0 %v1257_v25  ;;  %v1288_v24 = vld [vmem:[%s3995_s1 + $0xae8] sm:$0xff] }
 0x141   :  { %2404 = vmatpush3.msra.mxu1 %v1205_v26  ;;  %2431 = vmatpush3.msra.mxu0 %v1241_v27  ;;  %v1228_v25 = vld [vmem:[%s3995_s1 + $0x908] sm:$0xff]  ;;  %v892_v27 = vpop.f32.mrf.mxu0 }
 0x142   :  { %2405 = vmatprep.subr.mxu1 %v1220_v28  ;;  %2432 = vmatprep.subr.mxu0 %v1256_v29  ;;  %v1272_v26 = vld [vmem:[%s3995_s1 + $0xa68] sm:$0xff]  ;;  %v936_v29 = vmul.f32 %v914_v21, %v821_v20 }
 0x143   :  { %2406 = vmatpush3.msra.mxu1 %v1204_v30  ;;  %2433 = vmatpush3.msra.mxu0 %v1240_v31  ;;  %v916_v28 = vld [vmem:[%s3997_s3 + $0xa8] sm:$0xff]  ;;  %v1243_v30 = vld [vmem:[%s3995_s1 + $0x980] sm:$0xff] }
 0x144   :  { %2407 = vmatprep.subr.mxu1 %v1219_v4  ;;  %2434 = vmatprep.subr.mxu0 %v1255_v32  ;;  %v1287_v31 = vld [vmem:[%s3995_s1 + $0xae0] sm:$0xff]  ;;  %v935_v4 = vmul.f32 %v913_v22, %v819_v8 }
 0x145   :  { %2408 = vmatpush3.msra.mxu1 %v1203_v33  ;;  %2435 = vmatpush3.msra.mxu0 %v1239_v34  ;;  %v1227_v32 = vld [vmem:[%s3995_s1 + $0x900] sm:$0xff]  ;;  %v938_v34 = vmul.f32 %v916_v28, %v892_v27 }
 0x146   :  { %2409 = vmatprep.subr.mxu1 %v1218_v35  ;;  %2436 = vmatprep.subr.mxu0 %v1254_v36  ;;  %v1271_v33 = vld [vmem:[%s3995_s1 + $0xa60] sm:$0xff]  ;;  %v1286_v35 = vld [vmem:[%s3995_s1 + $0xad8] sm:$0xff] }
 0x147   :  { %2410 = vmatpush3.msra.mxu1 %v1202_v37  ;;  %2437 = vmatpush3.msra.mxu0 %v1238_v38  ;;  %v1270_v36 = vld [vmem:[%s3995_s1 + $0xa58] sm:$0xff]  ;;  %v1285_v37 = vld [vmem:[%s3995_s1 + $0xad0] sm:$0xff] }
 0x148   :  { %2411 = vmatprep.subr.mxu1 %v1217_v39  ;;  %2438 = vmatprep.subr.mxu0 %v1253_v40  ;;  %v1269_v38 = vld [vmem:[%s3995_s1 + $0xa50] sm:$0xff]  ;;  %v2071_v39 = vld [vmem:[%s3998_s4] sm:$0xff]  ;;  %v1284_v40 = vld [vmem:[%s3995_s1 + $0xac8] sm:$0xff] }
 0x149   :  { %2412 = vmatpush3.msra.mxu1 %v1201_v9  ;;  %2439 = vmatpush3.msra.mxu0 %v1237_v41  ;;  %v2529_v9 = vmov 0   ;;  %v1268_v41 = vld [vmem:[%s3995_s1 + $0xa48] sm:$0xff] }
 0x14a   :  { %2413 = vmatprep.subr.mxu1 %v1216_v42  ;;  %2440 = vmatprep.subr.mxu0 %v1252_v43  ;;  %v1283_v42 = vld [vmem:[%s3995_s1 + $0xac0] sm:$0xff] }
 0x14b   :  { %2414 = vmatpush3.msra.mxu1 %v1200_v44  ;;  %2441 = vmatpush3.msra.mxu0 %v1236_v45  ;;  %v1267_v43 = vld [vmem:[%s3995_s1 + $0xa40] sm:$0xff]  ;;  %v1282_v44 = vld [vmem:[%s3995_s1 + $0xab8] sm:$0xff] }
 0x14c   :  { %2415 = vmatprep.subr.mxu1 %v1215_v46  ;;  %2442 = vmatprep.subr.mxu0 %v1251_v47  ;;  %v1266_v45 = vld [vmem:[%s3995_s1 + $0xa38] sm:$0xff]  ;;  %v1281_v46 = vld [vmem:[%s3995_s1 + $0xab0] sm:$0xff] }
 0x14d   :  { %2416 = vmatpush3.msra.mxu1 %v1199_v49  ;;  %2443 = vmatpush3.msra.mxu0 %v1235_v50  ;;  %v1265_v47 = vld [vmem:[%s3995_s1 + $0xa30] sm:$0xff]  ;;  %v1264_v49 = vld [vmem:[%s3995_s1 + $0xa28] sm:$0xff]  ;;  %v1279_v50 = vld [vmem:[%s3995_s1 + $0xaa0] sm:$0xff] }
 0x14e   :  { %2417 = vmatprep.subr.mxu1 %v1214_v51  ;;  %2444 = vmatprep.subr.mxu0 %v1250_v52  ;;  %v1263_v51 = vld [vmem:[%s3995_s1 + $0xa20] sm:$0xff]  ;;  %v1278_v52 = vld [vmem:[%s3995_s1 + $0xa98] sm:$0xff] }
 0x14f   :  { %2418 = vmatpush3.msra.mxu1 %v1198_v53  ;;  %2445 = vmatpush3.msra.mxu0 %v1234_v54  ;;  %v1262_v53 = vld [vmem:[%s3995_s1 + $0xa18] sm:$0xff]  ;;  %v1277_v54 = vld [vmem:[%s3995_s1 + $0xa90] sm:$0xff] }
 0x150   :  { %2419 = vmatprep.subr.mxu1 %v1213_v55  ;;  %2446 = vmatprep.subr.mxu0 %v1249_v56  ;;  %v1261_v55 = vld [vmem:[%s3995_s1 + $0xa10] sm:$0xff]  ;;  %v1276_v56 = vld [vmem:[%s3995_s1 + $0xa88] sm:$0xff] }
 0x151   :  { %2420 = vmatpush3.msra.mxu1 %v1197_v59  ;;  %2447 = vmatpush3.msra.mxu0 %v1233_v60  ;;  %v1275_v59 = vld [vmem:[%s3995_s1 + $0xa80] sm:$0xff] }
 0x152   :  { %2421 = vmatprep.subr.mxu1 %v1212_v61  ;;  %2448 = vmatprep.subr.mxu0 %v1248_v62  ;;  %v1259_v60 = vld [vmem:[%s3995_s1 + $0xa00] sm:$0xff]  ;;  %v937_v61 = vmul.f32 %v915_v58, %v3865_v15  ;;  %s2530_s1 = smov [#allocation2]  }
 0x153   :  { %2422 = vmatpush3.msra.mxu1 %v1196_v0  ;;  %2449 = vmatpush3.msra.mxu0 %v1232_v1  ;;  %s2094_s3 = sshll.u32 %s2530_s1, 4  ;;  %s2095_s3 = int_to_ptr.vmem [resolvable:$true] %s2094_s3 }
 0x154   :  { %2423 = vmatprep.subr.mxu1 %v1211_v3  ;;  %1915 = vmatprep.mubr.f32.mxu1 %v934_v63  ;;  %s2506_s7 = scalar_lea.vmem %s2095_s3, 16  ;;  %s2510_s8 = scalar_lea.vmem %s2095_s3, 32 }
 0x155   :  { %2450 = vmatprep.subr.mxu0 %v1247_v5  ;;  %2424 = vmatpush3.msra.mxu1 %v1195_v6  ;;  %p2507_p0 = scmp.ne.s32.totalorder %s2095_s3, %s2506_s7  ;;  %p2511_p1 = scmp.lt.s32.totalorder %s2095_s3, %s2095_s3 }
 0x156   :  { %2451 = vmatpush3.msra.mxu0 %v1231_v7  ;;  %1916 = vmatmul.mubr.f32.vlgmr.msra.gmra.mxu1 %v933_v10  ;;  %p2512_p2 = scmp.lt.s32.totalorder %s2510_s8, %s2506_s7 }
 0x157   :  { %2452 = vmatprep.subr.mxu0 %v1246_v11  ;;  %2463 = vmatprep.subr.mxu1 %v1290_v12 }
 0x158   :  { %2453 = vmatpush3.msra.mxu0 %v1230_v13  ;;  %2464 = vmatpush3.msra.mxu1 %v1274_v14  ;;  %p2513_p3 = por %p2512_p2, %p2511_p1 }
 0x159   :  { %2454 = vmatprep.subr.mxu0 %v1245_v16  ;;  %2465 = vmatprep.subr.mxu1 %v1289_v17 }
 0x15a   :  { %2455 = vmatpush3.msra.mxu0 %v1229_v18  ;;  %2466 = vmatpush3.msra.mxu1 %v1273_v19  ;;  %p2514_p4 = pnand %p2513_p3, %p2507_p0 }
 0x15b   :  { %2456 = vmatprep.subr.mxu0 %v1244_v23  ;;  %2467 = vmatprep.subr.mxu1 %v1288_v24 }
 0x15c   :  { %2457 = vmatpush3.msra.mxu0 %v1228_v25  ;;  %2468 = vmatpush3.msra.mxu1 %v1272_v26 }
 0x15d   :  { %2458 = vmatprep.subr.mxu0 %v1243_v30  ;;  %2469 = vmatprep.subr.mxu1 %v1287_v31 }
 0x15e   :  { %2459 = vmatpush3.msra.mxu0 %v1227_v32  ;;  %1985 = vmatprep.mubr.f32.mxu0 %v936_v29 }
 0x15f   :  { %2470 = vmatpush3.msra.mxu1 %v1271_v33  ;;  %1986 = vmatmul.mubr.f32.vlgmr.msra.gmra.mxu0 %v935_v4 }
 0x160   :  { %2471 = vmatprep.subr.mxu1 %v1286_v35  ;;  %2055 = vmatprep.mubr.f32.mxu1 %v938_v34 }
 0x161   :  { %2472 = vmatpush3.msra.mxu1 %v1270_v36  ;;  %2501 = vset.pattern.permute.xlu0 %v2529_v9 }
 0x162   :  { %2473 = vmatprep.subr.mxu1 %v1285_v37  ;;  %2074 = vperm.xlu0 %2501, %v2071_v39  }
 0x163   :  { %2474 = vmatpush3.msra.mxu1 %v1269_v38 }
 0x164   :  { %2475 = vmatprep.subr.mxu1 %v1284_v40 }
 0x165   :  { %2476 = vmatpush3.msra.mxu1 %v1268_v41 }
 0x166   :  { %2477 = vmatprep.subr.mxu1 %v1283_v42 }
 0x167   :  { %2478 = vmatpush3.msra.mxu1 %v1267_v43 }
 0x168   :  { %2479 = vmatprep.subr.mxu1 %v1282_v44 }
 0x169   :  { %2480 = vmatpush3.msra.mxu1 %v1266_v45 }
 0x16a   :  { %2481 = vmatprep.subr.mxu1 %v1281_v46 }
 0x16b   :  { %2482 = vmatpush3.msra.mxu1 %v1265_v47 }
 0x16c   :  { %2483 = vmatprep.subr.mxu1 %v1280_v48 }
 0x16d   :  { %2484 = vmatpush3.msra.mxu1 %v1264_v49 }
 0x16e   :  { %2485 = vmatprep.subr.mxu1 %v1279_v50 }
 0x16f   :  { %2486 = vmatpush3.msra.mxu1 %v1263_v51 }
 0x170   :  { %2487 = vmatprep.subr.mxu1 %v1278_v52 }
 0x171   :  { %2488 = vmatpush3.msra.mxu1 %v1262_v53 }
 0x172   :  { %2489 = vmatprep.subr.mxu1 %v1277_v54 }
 0x173   :  { %2490 = vmatpush3.msra.mxu1 %v1261_v55 }
 0x174   :  { %2491 = vmatprep.subr.mxu1 %v1276_v56 }
 0x175   :  { %2492 = vmatpush3.msra.mxu1 %v1260_v57 }
 0x176   :  { %2493 = vmatprep.subr.mxu1 %v1275_v59 }
 0x177   :  { %2494 = vmatpush3.msra.mxu1 %v1259_v60 }
 0x178   :  { %2056 = vmatmul.mubr.f32.vlgmr.msra.gmra.mxu1 %v937_v61 }
 0x190   :  { %v2145_v62 = vpop.f32.mrf.mxu1 }
 0x192   :  { %v2146_v0 = vpop.f32.mrf.mxu1 }
 0x193   :  { %v2147_v14 = vadd.f32 %v2146_v0, %v2145_v62 }
 0x198   :  { %v2180_v63 = vpop.f32.mrf.mxu0 }
 0x19a   :  { %v2181_v1 = vpop.f32.mrf.mxu0 }
 0x19b   :  { %v2182_v11 = vadd.f32 %v2181_v1, %v2180_v63 }
 0x19d   :  { %v1428_v17 = vadd.f32 %v2182_v11, %v2147_v14 }
 0x1b0   :  { %v2215_v2 = vpop.f32.mrf.mxu1 }
 0x1b2   :  { %v2216_v5 = vpop.f32.mrf.mxu1 }
 0x1b3   :  { %v2217_v16 = vadd.f32 %v2216_v5, %v2215_v2 }
 0x1b5   :  { %v1498_v20 = vadd.f32 %v2217_v16, %v1428_v17 }
 0x1b9   :  { %v2250_v3 = vpop.f32.mrf.mxu0 }
 0x1bb   :  { %v2251_v6 = vpop.f32.mrf.mxu0 }
 0x1bc   :  { %v2252_v18 = vadd.f32 %v2251_v6, %v2250_v3 }
 0x1be   :  { %v1568_v24 = vadd.f32 %v2252_v18, %v1498_v20 }
 0x1d2   :  { %v2285_v7 = vpop.f32.mrf.mxu1 }
 0x1d4   :  { %v2286_v10 = vpop.f32.mrf.mxu1 }
 0x1d5   :  { %v2287_v21 = vadd.f32 %v2286_v10, %v2285_v7 }
 0x1d7   :  { %v1638_v27 = vadd.f32 %v2287_v21, %v1568_v24 }
 0x1db   :  { %v2320_v8 = vpop.f32.mrf.mxu0 }
 0x1dd   :  { %v2321_v12 = vpop.f32.mrf.mxu0  ;;  %v2075_v50 = vpop.permute.xlu0 %2074 }
 0x1de   :  { %v2322_v25 = vadd.f32 %v2321_v12, %v2320_v8 }
 0x1e0   :  { %v1708_v30 = vadd.f32 %v2322_v25, %v1638_v27 }
 0x1f4   :  { %v2355_v13 = vpop.f32.mrf.mxu1 }
 0x1f6   :  { %v2356_v19 = vpop.f32.mrf.mxu1 }
 0x1f7   :  { %v2357_v28 = vadd.f32 %v2356_v19, %v2355_v13 }
 0x1f9   :  { %v1778_v32 = vadd.f32 %v2357_v28, %v1708_v30 }
 0x1fd   :  { %v2390_v15 = vpop.f32.mrf.mxu0 }
 0x1ff   :  { %v2391_v22 = vpop.f32.mrf.mxu0 }
 0x200   :  { %v2392_v31 = vadd.f32 %v2391_v22, %v2390_v15 }
 0x202   :  { %v1848_v34 = vadd.f32 %v2392_v31, %v1778_v32 }
 0x216   :  { %v2425_v23 = vpop.f32.mrf.mxu1 }
 0x218   :  { %v2426_v29 = vpop.f32.mrf.mxu1 }
 0x219   :  { %v2427_v33 = vadd.f32 %v2426_v29, %v2425_v23 }
 0x21b   :  { %v1918_v37 = vadd.f32 %v2427_v33, %v1848_v34 }
 0x21f   :  { %v2460_v26 = vpop.f32.mrf.mxu0 }
 0x221   :  { %v2461_v4 = vpop.f32.mrf.mxu0 }
 0x222   :  { %v2462_v35 = vadd.f32 %v2461_v4, %v2460_v26 }
 0x224   :  { %v1988_v39 = vadd.f32 %v2462_v35, %v1918_v37 }
 0x238   :  { %v2495_v36 = vpop.f32.mrf.mxu1 }
 0x23a   :  { %v2496_v38 = vpop.f32.mrf.mxu1 }
 0x23b   :  { %v2497_v40 = vadd.f32 %v2496_v38, %v2495_v36 }
 0x23d   :  { %v2058_v9 = vadd.f32 %v2497_v40, %v1988_v39 }
 0x23f   :  { %v2062_v41 = vand.u32 2147483647, %v2058_v9  ;;  %v2061_v47 = vmin.f32 %v2058_v9, 0.0 }
 0x241   :  { %v2063_v42 = vsub.f32 0.0, %v2062_v41 }
 0x243   :  { %v2064_v43 = vmul.f32 1.442695, %v2063_v42 }
 0x245   :  { %2502 = vpow2.f32 %v2064_v43 }
 0x252   :  { %v2503_v44 = vpop.eup %2502 }
 0x253   :  { %v2066_v45 = vadd.f32 1.0, %v2503_v44 }
 0x255   :  { %2504 = vlog2.f32 %v2066_v45 }
 0x262   :  { %v2505_v46 = vpop.eup %2504 }
 0x263   :  { %v2068_v48 = vmul.f32 0.6931472, %v2505_v46 }
 0x265   :  { %v2069_v49 = vsub.f32 %v2061_v47, %v2068_v48 }
 0x267   :  { %v2070_v51 = vmax.f32 %v2069_v49, -20.723267 }
 0x269   :  { %v2077_v52 = vmul.f32 %v2075_v50, %v2070_v51 }
 0x26b   :  { %v2079_v53 = vsel %vm2078_vm1, %v2077_v52, 0.0 }
 0x26c   :  { %v2080_v54 = vrot.slane %v2079_v53, 4 }
 0x26e   :  { %v2081_v55 = vadd.f32 %v2080_v54, %v2079_v53 }
 0x270   :  { %v2082_v56 = vrot.slane %v2081_v55, 2 }
 0x272   :  { %v2083_v57 = vadd.f32 %v2082_v56, %v2081_v55 }
 0x274   :  { %v2084_v58 = vrot.slane %v2083_v57, 1 }
 0x276   :  { %v2085_v59 = vadd.f32 %v2084_v58, %v2083_v57 }
 0x278   :  { %2087 = vst.msk [vmem:[#allocation2] sm:$0x1] %vm2086_vm2, %v2085_v59 }
 0x279   :  { %2517 = shalt.err (!%p2514_p4)
}
 0x27a   :  { %2097 = dma.vmem_to_hbm [thread:$0]  %s2095_s3, 16, %s3999_s5, [#allocation3]  }
 0x27b   :  { %2526 = dma.done.wait [#allocation3], 16  }
 0x27c   :  { %2527 = vsyncadd [#allocation3], 4294967280 }
 0x27d   :  { %2101 = vsyncpa [#allocation3], 1 }

</bundles_post_ra>
